<compile_context>
chip_gen: v5e
topology: v5e:2x2
jax: 0.10.0
libtpu: 0.0.40
codegen_flags: <defaults>
</compile_context>

<pallas_src>
import functools
import math

import jax
import jax.numpy as jnp
from jax.experimental import pallas as pl
from jax.experimental.pallas import tpu as pltpu


def _round_up(n, m):
    return ((n + m - 1) // m) * m


def _layernorm(z, gamma, beta, n_true, eps=1e-5):
    """LayerNorm over the last axis, robust to zero-padded trailing lanes.

    Uses sum / n_true and E[z^2] - mu^2 so zero pad-lanes do not perturb the
    statistics; gamma/beta are zero-padded so padded output lanes stay zero.
    """
    inv_n = 1.0 / n_true
    mu = jnp.sum(z, axis=-1, keepdims=True) * inv_n
    ex2 = jnp.sum(z * z, axis=-1, keepdims=True) * inv_n
    var = ex2 - mu * mu
    return (z - mu) * jax.lax.rsqrt(var + eps) * gamma + beta


def encoder_block_kernel(x_ref, wqkv_ref, wo_ref, w1_ref, b1_ref, w2_ref,
                         b2_ref, g1_ref, be1_ref, g2_ref, be2_ref,
                         o_ref, ctx_sc, *, num_heads, d_k, d_model, block_b,
                         seq_len, matmul_dtype, approx_recip):
    f32 = jnp.float32
    md = matmul_dtype
    rows = block_b * seq_len
    C = d_model                       # true model width
    Cp = x_ref.shape[-1]              # lane-padded width (multiple of 128)

    x = x_ref[...]                                        # (rows, Cp) f32

    # ---- residual connection 0: pre-norm + self-attention ------------------
    ln1 = _layernorm(x, g1_ref[...], be1_ref[...], C)
    ln1_md = ln1.astype(md)

    # Fused QKV: one wide MXU matmul, then static lane-aligned slices.
    qkv = jnp.dot(ln1_md, wqkv_ref[...], preferred_element_type=f32)
    q = qkv[:, :Cp] * (1.0 / math.sqrt(d_k))              # scale applied once
    k = qkv[:, Cp:2 * Cp]
    v = qkv[:, 2 * Cp:]

    if Cp != C:
        # Padded tail lanes of the context scratch must be zero so the wo
        # matmul ignores them (only needed when C was lane-padded).
        ctx_sc[...] = jnp.zeros_like(ctx_sc)

    # Heads: write each head's context into the (rows, Cp) VMEM scratch at its
    # lane offset; the output projection is a single full-depth matmul below.
    for h in range(num_heads):                            # static unroll (H small)
        sl = slice(h * d_k, (h + 1) * d_k)
        qh = q[:, sl].reshape(block_b, seq_len, d_k).astype(md)
        kh = k[:, sl].reshape(block_b, seq_len, d_k).astype(md)
        vh = v[:, sl].reshape(block_b, seq_len, d_k).astype(md)

        # scores: contraction over d_k, batched over the block's batch dim.
        s = jnp.einsum('bqd,bkd->bqk', qh, kh, preferred_element_type=f32)
        s = s - jnp.max(s, axis=-1, keepdims=True)
        p = jnp.exp(s)                                    # f32 softmax math
        denom = jnp.sum(p, axis=-1, keepdims=True)        # (b, T, 1)

        ctx = jnp.einsum('bqk,bkd->bqd', p.astype(md), vh,
                         preferred_element_type=f32)
        # Softmax is linear in p: normalize the (T, d_k) context instead of
        # the (T, T) probability matrix.
        ctx = ctx * pl.reciprocal(denom, approx=approx_recip)
        ctx_sc[:, sl] = ctx.reshape(rows, d_k).astype(ctx_sc.dtype)

    # Single K = Cp output projection (full-depth MXU contraction).
    attn = jnp.dot(ctx_sc[...], wo_ref[...], preferred_element_type=f32)
    out1 = x + attn                                       # dropout == identity (eval)

    # ---- residual connection 1: pre-norm + feed-forward ---------------------
    ln2 = _layernorm(out1, g2_ref[...], be2_ref[...], C)
    h1 = jnp.dot(ln2.astype(md), w1_ref[...],
                 preferred_element_type=f32) + b1_ref[...]
    h1 = jnp.maximum(h1, 0.0)                             # ReLU in f32
    ff = jnp.dot(h1.astype(md), w2_ref[...],
                 preferred_element_type=f32) + b2_ref[...]

    o_ref[...] = out1 + ff


def _pick_block_b(B, T, target_rows):
    """Batch elements per grid step: aim for ~target_rows rows per step while
    keeping >=2 grid steps so the parallel axis can split across TensorCores
    (matters on v7x's 2-TC chips)."""
    if B <= 1:
        return 1
    cap = max(1, min(B // 2, max(1, target_rows // T)))
    for bb in range(cap, 0, -1):
        if B % bb == 0:
            return bb
    return 1


def _vmem_capacity_bytes():
    """Physical per-core VMEM (128 MiB v5e/v6e, 64 MiB v7x); conservative
    fallback when the query is unavailable."""
    try:
        return int(pltpu.get_tpu_info().vmem_capacity_bytes)
    except Exception:
        return 64 << 20


def _vmem_limit_bytes(rows_blk, block_b, T, Cp, Fp, w_itemsize, capacity,
                      single_buffer_weights):
    weights = (4 * Cp * Cp + 2 * Cp * Fp) * w_itemsize     # wqkv + wo + w1 + w2
    small = (5 * Cp + Fp) * 4                              # LN params + biases
    io = 2 * rows_blk * Cp * 4                             # x block + out block
    scratch = rows_blk * Cp * w_itemsize                   # ctx scratch
    acts = rows_blk * (8 * Cp + 2 * Fp) * 4 + 2 * block_b * T * T * 4
    wmult = 1 if single_buffer_weights else 2              # constant weights
    est = wmult * weights + 2 * (small + io) + scratch + acts
    limit = max(est + (8 << 20), 32 << 20)
    return int(min(limit, capacity - (4 << 20)))           # never exceed physical


def encoder_block(x, params, *, num_heads, matmul_dtype=jnp.bfloat16,
                  block_b=None):
    B, T, C = x.shape
    d_ff = params["w1"].shape[1]
    assert C % num_heads == 0
    d_k = C // num_heads

    md = jnp.dtype(matmul_dtype)
    # Approximate (EUP) reciprocal only in the reduced-precision path; the f32
    # path stays comparable to the PyTorch-style reference.
    approx_recip = bool(md != jnp.dtype(jnp.float32))

    capacity = _vmem_capacity_bytes()
    target_rows = 512 if capacity >= (100 << 20) else 256   # v5e/v6e vs v7x
    if block_b is None:
        block_b = _pick_block_b(B, T, target_rows)
    if (block_b * T) % 8 != 0 and block_b != B:
        block_b = B                       # full-extent block is always legal
    assert B % block_b == 0
    rows_blk = block_b * T
    rows = B * T
    grid = (rows // rows_blk,)

    # Lane-pad C and d_ff to multiples of 128 so loads/stores and intermediate
    # slabs are lane-dense. Pad lanes are zero everywhere and the kernel's
    # LayerNorm divides by the true C, so semantics are exact.
    Cp = _round_up(C, 128)
    Fp = _round_up(d_ff, 128)

    def pad2(a, r, c):
        pr, pc = r - a.shape[0], c - a.shape[1]
        return jnp.pad(a, ((0, pr), (0, pc))) if (pr or pc) else a

    # Wrapper-side layout prep (one-off for the weights in a real model):
    # flatten rows, lane-pad, cast matmul weights, fuse QKV into one (Cp, 3Cp).
    x2d = pad2(x.reshape(rows, C).astype(jnp.float32), rows, Cp)
    wqkv = jnp.concatenate(
        [pad2(params[n].astype(md), Cp, Cp) for n in ("wq", "wk", "wv")],
        axis=1)                                            # (Cp, 3*Cp)
    wo = pad2(params["wo"].astype(md), Cp, Cp)
    w1 = pad2(params["w1"].astype(md), Cp, Fp)
    w2 = pad2(params["w2"].astype(md), Fp, Cp)
    b1 = pad2(params["b1"].astype(jnp.float32), 1, Fp)
    b2 = pad2(params["b2"].astype(jnp.float32), 1, Cp)
    g1 = pad2(params["g1"].astype(jnp.float32), 1, Cp)
    be1 = pad2(params["be1"].astype(jnp.float32), 1, Cp)
    g2 = pad2(params["g2"].astype(jnp.float32), 1, Cp)
    be2 = pad2(params["be2"].astype(jnp.float32), 1, Cp)
    args = (x2d, wqkv, wo, w1, b1, w2, b2, g1, be1, g2, be2)

    kernel = functools.partial(
        encoder_block_kernel,
        num_heads=num_heads, d_k=d_k, d_model=C, block_b=block_b, seq_len=T,
        matmul_dtype=md, approx_recip=approx_recip)

    def call(single_buffer_weights):
        def wspec(shape):
            # Constant-index weight blocks: single-buffer them so the default
            # double-buffering does not burn 2x VMEM.
            if single_buffer_weights:
                return pl.BlockSpec(shape, lambda i: (0, 0),
                                    pipeline_mode=pl.Buffered(1))
            return pl.BlockSpec(shape, lambda i: (0, 0))

        return pl.pallas_call(
            kernel,
            out_shape=jax.ShapeDtypeStruct((rows, Cp), jnp.float32),
            grid_spec=pltpu.PrefetchScalarGridSpec(
                num_scalar_prefetch=0,
                grid=grid,
                in_specs=[
                    pl.BlockSpec((rows_blk, Cp), lambda i: (i, 0)),   # x rows
                    wspec((Cp, 3 * Cp)),                              # wqkv
                    wspec((Cp, Cp)),                                  # wo
                    wspec((Cp, Fp)),                                  # w1
                    wspec((1, Fp)),                                   # b1
                    wspec((Fp, Cp)),                                  # w2
                    wspec((1, Cp)),                                   # b2
                    wspec((1, Cp)),                                   # ln1 gamma
                    wspec((1, Cp)),                                   # ln1 beta
                    wspec((1, Cp)),                                   # ln2 gamma
                    wspec((1, Cp)),                                   # ln2 beta
                ],
                out_specs=pl.BlockSpec((rows_blk, Cp), lambda i: (i, 0)),
                scratch_shapes=[pltpu.VMEM((rows_blk, Cp), md)],      # ctx
            ),
            compiler_params=pltpu.CompilerParams(
                dimension_semantics=("parallel",),
                vmem_limit_bytes=_vmem_limit_bytes(
                    rows_blk, block_b, T, Cp, Fp, md.itemsize, capacity,
                    single_buffer_weights)),
        )(*args)

    try:
        out2d = call(True)
    except Exception:
        # pipeline_mode=pl.Buffered(1) unsupported on this jax version; the
        # double-buffered fallback is functionally identical.
        out2d = call(False)

    return out2d[:, :C].reshape(B, T, C)


def encoder_block_ref(x, params, *, num_heads, matmul_dtype=jnp.float32):
    """Pure-JAX reference mirroring the PyTorch forward (eval mode).

    `matmul_dtype` mirrors the kernel's mixed-precision policy (operands cast
    before each matmul, f32 accumulation); float32 gives exact PyTorch
    semantics."""
    B, T, C = x.shape
    d_k = C // num_heads
    md = jnp.dtype(matmul_dtype)

    def ln(z, g, b):
        mu = jnp.mean(z, axis=-1, keepdims=True)
        var = jnp.mean((z - mu) ** 2, axis=-1, keepdims=True)
        return (z - mu) / jnp.sqrt(var + 1e-5) * g + b

    def mm(a, w):
        return jnp.einsum('...i,ij->...j', a.astype(md), w.astype(md),
                          preferred_element_type=jnp.float32)

    ln1 = ln(x, params["g1"], params["be1"])
    q = mm(ln1, params["wq"]) / math.sqrt(d_k)
    k = mm(ln1, params["wk"])
    v = mm(ln1, params["wv"])
    q = q.reshape(B, T, num_heads, d_k).transpose(0, 2, 1, 3)
    k = k.reshape(B, T, num_heads, d_k).transpose(0, 2, 1, 3)
    v = v.reshape(B, T, num_heads, d_k).transpose(0, 2, 1, 3)
    s = jnp.einsum('bhqd,bhkd->bhqk', q.astype(md), k.astype(md),
                   preferred_element_type=jnp.float32)
    p = jax.nn.softmax(s, axis=-1)
    ctx = jnp.einsum('bhqk,bhkd->bhqd', p.astype(md), v.astype(md),
                     preferred_element_type=jnp.float32)
    attn = ctx.transpose(0, 2, 1, 3).reshape(B, T, C)
    out1 = x + mm(attn, params["wo"])
    ln2 = ln(out1, params["g2"], params["be2"])
    h1 = jnp.maximum(mm(ln2, params["w1"]) + params["b1"], 0.0)
    ff = mm(h1, params["w2"]) + params["b2"]
    return out1 + ff


if __name__ == "__main__":
    B, T, C = 2, 8, 32         # batch, seq, d_model
    num_heads, d_ff = 4, 64

    key = jax.random.PRNGKey(0)
    ks = jax.random.split(key, 10)

    def init(k, shape, scale):
        return (jax.random.uniform(k, shape, jnp.float32) * 2.0 - 1.0) * scale

    params = {
        "wq": init(ks[0], (C, C), 1.0 / math.sqrt(C)),
        "wk": init(ks[1], (C, C), 1.0 / math.sqrt(C)),
        "wv": init(ks[2], (C, C), 1.0 / math.sqrt(C)),
        "wo": init(ks[3], (C, C), 1.0 / math.sqrt(C)),
        "w1": init(ks[4], (C, d_ff), 1.0 / math.sqrt(C)),
        "b1": init(ks[5], (1, d_ff), 1.0 / math.sqrt(C)),
        "w2": init(ks[6], (d_ff, C), 1.0 / math.sqrt(d_ff)),
        "b2": init(ks[7], (1, C), 1.0 / math.sqrt(d_ff)),
        "g1": jnp.ones((1, C), jnp.float32),
        "be1": jnp.zeros((1, C), jnp.float32),
        "g2": jnp.ones((1, C), jnp.float32),
        "be2": jnp.zeros((1, C), jnp.float32),
    }

    x = jax.random.normal(ks[8], (B, T, C), jnp.float32)

    # 1) Exact-semantics check: f32 matmuls, tight tolerance vs PyTorch-style ref.
    out_f32 = jax.block_until_ready(
        encoder_block(x, params, num_heads=num_heads, matmul_dtype=jnp.float32))
    ref_f32 = encoder_block_ref(x, params, num_heads=num_heads,
                                matmul_dtype=jnp.float32)
    assert out_f32.shape == (B, T, C)
    assert jnp.allclose(out_f32, ref_f32, atol=1e-4, rtol=1e-4), \
        "f32 mismatch vs reference"

    # 2) Performance path: bf16 matmul inputs with f32 accumulation (default),
    #    checked against a reference mirroring the same mixed precision.
    out_bf16 = jax.block_until_ready(
        encoder_block(x, params, num_heads=num_heads, matmul_dtype=jnp.bfloat16))
    ref_bf16 = encoder_block_ref(x, params, num_heads=num_heads,
                                 matmul_dtype=jnp.bfloat16)
    assert jnp.allclose(out_bf16, ref_bf16, atol=5e-2, rtol=5e-2), \
        "bf16 mismatch vs mixed-precision reference"

    print("KERNEL_OK")
</pallas_src>

<mosaic_0001>
module attributes {stable_mosaic.version = 11 : i64} {
  func.func @encoder_block_kernel(%arg0: i32, %arg1: memref<8x128xf32, #tpu.memory_space<vmem>>, %arg2: memref<128x384xf32, #tpu.memory_space<vmem>>, %arg3: memref<128x128xf32, #tpu.memory_space<vmem>>, %arg4: memref<128x128xf32, #tpu.memory_space<vmem>>, %arg5: memref<1x128xf32, #tpu.memory_space<vmem>>, %arg6: memref<128x128xf32, #tpu.memory_space<vmem>>, %arg7: memref<1x128xf32, #tpu.memory_space<vmem>>, %arg8: memref<1x128xf32, #tpu.memory_space<vmem>>, %arg9: memref<1x128xf32, #tpu.memory_space<vmem>>, %arg10: memref<1x128xf32, #tpu.memory_space<vmem>>, %arg11: memref<1x128xf32, #tpu.memory_space<vmem>>, %arg12: memref<8x128xf32, #tpu.memory_space<vmem>>, %arg13: memref<8x128xf32, #tpu.memory_space<vmem>>) attributes {dimension_semantics = [#tpu.dimension_semantics<parallel>], iteration_bounds = array<i64: 2>, scalar_prefetch = 0 : i64, scratch_operands = 1 : i64, tpu.core_type = #tpu.core_type<tc>, window_params = [{transform_indices = @transform_0, window_bounds = array<i64: 8, 128>}, {pipeline_mode = #tpu.pipeline_mode<synchronous>, transform_indices = @transform_1, window_bounds = array<i64: 128, 384>}, {pipeline_mode = #tpu.pipeline_mode<synchronous>, transform_indices = @transform_2, window_bounds = array<i64: 128, 128>}, {pipeline_mode = #tpu.pipeline_mode<synchronous>, transform_indices = @transform_3, window_bounds = array<i64: 128, 128>}, {pipeline_mode = #tpu.pipeline_mode<synchronous>, transform_indices = @transform_4, window_bounds = array<i64: 1, 128>}, {pipeline_mode = #tpu.pipeline_mode<synchronous>, transform_indices = @transform_5, window_bounds = array<i64: 128, 128>}, {pipeline_mode = #tpu.pipeline_mode<synchronous>, transform_indices = @transform_6, window_bounds = array<i64: 1, 128>}, {pipeline_mode = #tpu.pipeline_mode<synchronous>, transform_indices = @transform_7, window_bounds = array<i64: 1, 128>}, {pipeline_mode = #tpu.pipeline_mode<synchronous>, transform_indices = @transform_8, window_bounds = array<i64: 1, 128>}, {pipeline_mode = #tpu.pipeline_mode<synchronous>, transform_indices = @transform_9, window_bounds = array<i64: 1, 128>}, {pipeline_mode = #tpu.pipeline_mode<synchronous>, transform_indices = @transform_10, window_bounds = array<i64: 1, 128>}, {transform_indices = @transform_11, window_bounds = array<i64: 8, 128>}]} {
    %c0 = arith.constant 0 : index
    %c0_0 = arith.constant 0 : index
    %0 = vector.load %arg1[%c0, %c0_0] : memref<8x128xf32, #tpu.memory_space<vmem>>, vector<8x128xf32>
    %c0_1 = arith.constant 0 : index
    %c0_2 = arith.constant 0 : index
    %1 = vector.load %arg8[%c0_1, %c0_2] : memref<1x128xf32, #tpu.memory_space<vmem>>, vector<1x128xf32>
    %c0_3 = arith.constant 0 : index
    %c0_4 = arith.constant 0 : index
    %2 = vector.load %arg9[%c0_3, %c0_4] : memref<1x128xf32, #tpu.memory_space<vmem>>, vector<1x128xf32>
    %cst = arith.constant dense<0.000000e+00> : vector<8xf32>
    %3 = vector.multi_reduction <add>, %0, %cst [1] : vector<8x128xf32> to vector<8xf32>
    %4 = vector.shape_cast %3 : vector<8xf32> to vector<8x1xf32>
    %cst_5 = arith.constant 3.125000e-02 : f32
    %5 = vector.broadcast %cst_5 : f32 to vector<8x1xf32>
    %6 = arith.mulf %4, %5 : vector<8x1xf32>
    %7 = arith.mulf %0, %0 : vector<8x128xf32>
    %cst_6 = arith.constant dense<0.000000e+00> : vector<8xf32>
    %8 = vector.multi_reduction <add>, %7, %cst_6 [1] : vector<8x128xf32> to vector<8xf32>
    %9 = vector.shape_cast %8 : vector<8xf32> to vector<8x1xf32>
    %cst_7 = arith.constant 3.125000e-02 : f32
    %10 = vector.broadcast %cst_7 : f32 to vector<8x1xf32>
    %11 = arith.mulf %9, %10 : vector<8x1xf32>
    %12 = arith.mulf %6, %6 : vector<8x1xf32>
    %13 = arith.subf %11, %12 : vector<8x1xf32>
    %14 = vector.broadcast %6 : vector<8x1xf32> to vector<8x128xf32>
    %15 = arith.subf %0, %14 : vector<8x128xf32>
    %cst_8 = arith.constant 9.99999974E-6 : f32
    %16 = vector.broadcast %cst_8 : f32 to vector<8x1xf32>
    %17 = arith.addf %13, %16 : vector<8x1xf32>
    %18 = math.rsqrt %17 : vector<8x1xf32>
    %19 = vector.broadcast %18 : vector<8x1xf32> to vector<8x128xf32>
    %20 = arith.mulf %15, %19 : vector<8x128xf32>
    %21 = vector.broadcast %1 : vector<1x128xf32> to vector<8x128xf32>
    %22 = arith.mulf %20, %21 : vector<8x128xf32>
    %23 = vector.broadcast %2 : vector<1x128xf32> to vector<8x128xf32>
    %24 = arith.addf %22, %23 : vector<8x128xf32>
    %c0_9 = arith.constant 0 : index
    %c0_10 = arith.constant 0 : index
    %25 = vector.load %arg2[%c0_9, %c0_10] : memref<128x384xf32, #tpu.memory_space<vmem>>, vector<128x384xf32>
    %cst_11 = arith.constant dense<0.000000e+00> : vector<8x384xf32>
    %26 = tpu.matmul %24, %25, %cst_11 {dimension_numbers = #tpu.dot_dimension_numbers<[1], [0], [0], [1], [0, 0, 1, 1], [], []>} : vector<8x128xf32>, vector<128x384xf32>, vector<8x384xf32> -> vector<8x384xf32>
    %27 = vector.extract_strided_slice %26 {offsets = [0, 0], sizes = [8, 128], strides = [1, 1]} : vector<8x384xf32> to vector<8x128xf32>
    %cst_12 = arith.constant 0.353553385 : f32
    %28 = vector.broadcast %cst_12 : f32 to vector<8x128xf32>
    %29 = arith.mulf %27, %28 : vector<8x128xf32>
    %30 = vector.extract_strided_slice %26 {offsets = [0, 128], sizes = [8, 128], strides = [1, 1]} : vector<8x384xf32> to vector<8x128xf32>
    %31 = vector.extract_strided_slice %26 {offsets = [0, 256], sizes = [8, 128], strides = [1, 1]} : vector<8x384xf32> to vector<8x128xf32>
    %cst_13 = arith.constant 0.000000e+00 : f32
    %32 = vector.broadcast %cst_13 : f32 to vector<8x128xf32>
    %c0_14 = arith.constant 0 : index
    %c0_15 = arith.constant 0 : index
    %33 = vector.load %arg13[%c0_14, %c0_15] : memref<8x128xf32, #tpu.memory_space<vmem>>, vector<8x128xf32>
    tpu.vector_store %arg13[%c0_14, %c0_15], %32 {strides = array<i32>} : memref<8x128xf32, #tpu.memory_space<vmem>>, vector<8x128xf32>,
    %34 = vector.extract_strided_slice %29 {offsets = [0, 0], sizes = [8, 8], strides = [1, 1]} : vector<8x128xf32> to vector<8x8xf32>
    %35 = vector.shape_cast %34 : vector<8x8xf32> to vector<1x8x8xf32>
    %36 = vector.extract_strided_slice %30 {offsets = [0, 0], sizes = [8, 8], strides = [1, 1]} : vector<8x128xf32> to vector<8x8xf32>
    %37 = vector.shape_cast %36 : vector<8x8xf32> to vector<1x8x8xf32>
    %38 = vector.extract_strided_slice %31 {offsets = [0, 0], sizes = [8, 8], strides = [1, 1]} : vector<8x128xf32> to vector<8x8xf32>
    %39 = vector.shape_cast %38 : vector<8x8xf32> to vector<1x8x8xf32>
    "tpu.trace_start"() <{level = 10 : i32, message = "bqd,bkd->bqk"}> : () -> ()
    %cst_16 = arith.constant dense<0.000000e+00> : vector<1x8x8xf32>
    %40 = tpu.matmul %35, %37, %cst_16 {dimension_numbers = #tpu.dot_dimension_numbers<[2], [2], [1], [1], [0, 0, 0, 1, 1, 1], [0], [0]>} : vector<1x8x8xf32>, vector<1x8x8xf32>, vector<1x8x8xf32> -> vector<1x8x8xf32>
    "tpu.trace_stop"() : () -> ()
    %cst_17 = arith.constant dense<0xFF800000> : vector<1x8xf32>
    %41 = vector.multi_reduction <maximumf>, %40, %cst_17 [2] : vector<1x8x8xf32> to vector<1x8xf32>
    %42 = vector.shape_cast %41 : vector<1x8xf32> to vector<1x8x1xf32>
    %43 = vector.broadcast %42 : vector<1x8x1xf32> to vector<1x8x8xf32>
    %44 = arith.subf %40, %43 : vector<1x8x8xf32>
    %45 = math.exp %44 : vector<1x8x8xf32>
    %cst_18 = arith.constant dense<0.000000e+00> : vector<1x8xf32>
    %46 = vector.multi_reduction <add>, %45, %cst_18 [2] : vector<1x8x8xf32> to vector<1x8xf32>
    %47 = vector.shape_cast %46 : vector<1x8xf32> to vector<1x8x1xf32>
    "tpu.trace_start"() <{level = 10 : i32, message = "bqk,bkd->bqd"}> : () -> ()
    %cst_19 = arith.constant dense<0.000000e+00> : vector<1x8x8xf32>
    %48 = tpu.matmul %45, %39, %cst_19 {dimension_numbers = #tpu.dot_dimension_numbers<[2], [1], [1], [2], [0, 0, 0, 1, 1, 2], [0], [0]>} : vector<1x8x8xf32>, vector<1x8x8xf32>, vector<1x8x8xf32> -> vector<1x8x8xf32>
    "tpu.trace_stop"() : () -> ()
    %49 = tpu.reciprocal %47 : vector<1x8x1xf32> -> vector<1x8x1xf32>
    %50 = vector.broadcast %49 : vector<1x8x1xf32> to vector<1x8x8xf32>
    %51 = arith.mulf %48, %50 : vector<1x8x8xf32>
    %52 = vector.shape_cast %51 : vector<1x8x8xf32> to vector<8x8xf32>
    %c0_20 = arith.constant 0 : index
    %c0_21 = arith.constant 0 : index
    %53 = vector.load %arg13[%c0_20, %c0_21] : memref<8x128xf32, #tpu.memory_space<vmem>>, vector<8x8xf32>
    tpu.vector_store %arg13[%c0_20, %c0_21], %52 {strides = array<i32>} : memref<8x128xf32, #tpu.memory_space<vmem>>, vector<8x8xf32>,
    %54 = vector.extract_strided_slice %29 {offsets = [0, 8], sizes = [8, 8], strides = [1, 1]} : vector<8x128xf32> to vector<8x8xf32>
    %55 = vector.shape_cast %54 : vector<8x8xf32> to vector<1x8x8xf32>
    %56 = vector.extract_strided_slice %30 {offsets = [0, 8], sizes = [8, 8], strides = [1, 1]} : vector<8x128xf32> to vector<8x8xf32>
    %57 = vector.shape_cast %56 : vector<8x8xf32> to vector<1x8x8xf32>
    %58 = vector.extract_strided_slice %31 {offsets = [0, 8], sizes = [8, 8], strides = [1, 1]} : vector<8x128xf32> to vector<8x8xf32>
    %59 = vector.shape_cast %58 : vector<8x8xf32> to vector<1x8x8xf32>
    "tpu.trace_start"() <{level = 10 : i32, message = "bqd,bkd->bqk"}> : () -> ()
    %cst_22 = arith.constant dense<0.000000e+00> : vector<1x8x8xf32>
    %60 = tpu.matmul %55, %57, %cst_22 {dimension_numbers = #tpu.dot_dimension_numbers<[2], [2], [1], [1], [0, 0, 0, 1, 1, 1], [0], [0]>} : vector<1x8x8xf32>, vector<1x8x8xf32>, vector<1x8x8xf32> -> vector<1x8x8xf32>
    "tpu.trace_stop"() : () -> ()
    %cst_23 = arith.constant dense<0xFF800000> : vector<1x8xf32>
    %61 = vector.multi_reduction <maximumf>, %60, %cst_23 [2] : vector<1x8x8xf32> to vector<1x8xf32>
    %62 = vector.shape_cast %61 : vector<1x8xf32> to vector<1x8x1xf32>
    %63 = vector.broadcast %62 : vector<1x8x1xf32> to vector<1x8x8xf32>
    %64 = arith.subf %60, %63 : vector<1x8x8xf32>
    %65 = math.exp %64 : vector<1x8x8xf32>
    %cst_24 = arith.constant dense<0.000000e+00> : vector<1x8xf32>
    %66 = vector.multi_reduction <add>, %65, %cst_24 [2] : vector<1x8x8xf32> to vector<1x8xf32>
    %67 = vector.shape_cast %66 : vector<1x8xf32> to vector<1x8x1xf32>
    "tpu.trace_start"() <{level = 10 : i32, message = "bqk,bkd->bqd"}> : () -> ()
    %cst_25 = arith.constant dense<0.000000e+00> : vector<1x8x8xf32>
    %68 = tpu.matmul %65, %59, %cst_25 {dimension_numbers = #tpu.dot_dimension_numbers<[2], [1], [1], [2], [0, 0, 0, 1, 1, 2], [0], [0]>} : vector<1x8x8xf32>, vector<1x8x8xf32>, vector<1x8x8xf32> -> vector<1x8x8xf32>
    "tpu.trace_stop"() : () -> ()
    %69 = tpu.reciprocal %67 : vector<1x8x1xf32> -> vector<1x8x1xf32>
    %70 = vector.broadcast %69 : vector<1x8x1xf32> to vector<1x8x8xf32>
    %71 = arith.mulf %68, %70 : vector<1x8x8xf32>
    %72 = vector.shape_cast %71 : vector<1x8x8xf32> to vector<8x8xf32>
    %c0_26 = arith.constant 0 : index
    %c8 = arith.constant 8 : index
    %73 = vector.load %arg13[%c0_26, %c8] : memref<8x128xf32, #tpu.memory_space<vmem>>, vector<8x8xf32>
    tpu.vector_store %arg13[%c0_26, %c8], %72 {strides = array<i32>} : memref<8x128xf32, #tpu.memory_space<vmem>>, vector<8x8xf32>,
    %74 = vector.extract_strided_slice %29 {offsets = [0, 16], sizes = [8, 8], strides = [1, 1]} : vector<8x128xf32> to vector<8x8xf32>
    %75 = vector.shape_cast %74 : vector<8x8xf32> to vector<1x8x8xf32>
    %76 = vector.extract_strided_slice %30 {offsets = [0, 16], sizes = [8, 8], strides = [1, 1]} : vector<8x128xf32> to vector<8x8xf32>
    %77 = vector.shape_cast %76 : vector<8x8xf32> to vector<1x8x8xf32>
    %78 = vector.extract_strided_slice %31 {offsets = [0, 16], sizes = [8, 8], strides = [1, 1]} : vector<8x128xf32> to vector<8x8xf32>
    %79 = vector.shape_cast %78 : vector<8x8xf32> to vector<1x8x8xf32>
    "tpu.trace_start"() <{level = 10 : i32, message = "bqd,bkd->bqk"}> : () -> ()
    %cst_27 = arith.constant dense<0.000000e+00> : vector<1x8x8xf32>
    %80 = tpu.matmul %75, %77, %cst_27 {dimension_numbers = #tpu.dot_dimension_numbers<[2], [2], [1], [1], [0, 0, 0, 1, 1, 1], [0], [0]>} : vector<1x8x8xf32>, vector<1x8x8xf32>, vector<1x8x8xf32> -> vector<1x8x8xf32>
    "tpu.trace_stop"() : () -> ()
    %cst_28 = arith.constant dense<0xFF800000> : vector<1x8xf32>
    %81 = vector.multi_reduction <maximumf>, %80, %cst_28 [2] : vector<1x8x8xf32> to vector<1x8xf32>
    %82 = vector.shape_cast %81 : vector<1x8xf32> to vector<1x8x1xf32>
    %83 = vector.broadcast %82 : vector<1x8x1xf32> to vector<1x8x8xf32>
    %84 = arith.subf %80, %83 : vector<1x8x8xf32>
    %85 = math.exp %84 : vector<1x8x8xf32>
    %cst_29 = arith.constant dense<0.000000e+00> : vector<1x8xf32>
    %86 = vector.multi_reduction <add>, %85, %cst_29 [2] : vector<1x8x8xf32> to vector<1x8xf32>
    %87 = vector.shape_cast %86 : vector<1x8xf32> to vector<1x8x1xf32>
    "tpu.trace_start"() <{level = 10 : i32, message = "bqk,bkd->bqd"}> : () -> ()
    %cst_30 = arith.constant dense<0.000000e+00> : vector<1x8x8xf32>
    %88 = tpu.matmul %85, %79, %cst_30 {dimension_numbers = #tpu.dot_dimension_numbers<[2], [1], [1], [2], [0, 0, 0, 1, 1, 2], [0], [0]>} : vector<1x8x8xf32>, vector<1x8x8xf32>, vector<1x8x8xf32> -> vector<1x8x8xf32>
    "tpu.trace_stop"() : () -> ()
    %89 = tpu.reciprocal %87 : vector<1x8x1xf32> -> vector<1x8x1xf32>
    %90 = vector.broadcast %89 : vector<1x8x1xf32> to vector<1x8x8xf32>
    %91 = arith.mulf %88, %90 : vector<1x8x8xf32>
    %92 = vector.shape_cast %91 : vector<1x8x8xf32> to vector<8x8xf32>
    %c0_31 = arith.constant 0 : index
    %c16 = arith.constant 16 : index
    %93 = vector.load %arg13[%c0_31, %c16] : memref<8x128xf32, #tpu.memory_space<vmem>>, vector<8x8xf32>
    tpu.vector_store %arg13[%c0_31, %c16], %92 {strides = array<i32>} : memref<8x128xf32, #tpu.memory_space<vmem>>, vector<8x8xf32>,
    %94 = vector.extract_strided_slice %29 {offsets = [0, 24], sizes = [8, 8], strides = [1, 1]} : vector<8x128xf32> to vector<8x8xf32>
    %95 = vector.shape_cast %94 : vector<8x8xf32> to vector<1x8x8xf32>
    %96 = vector.extract_strided_slice %30 {offsets = [0, 24], sizes = [8, 8], strides = [1, 1]} : vector<8x128xf32> to vector<8x8xf32>
    %97 = vector.shape_cast %96 : vector<8x8xf32> to vector<1x8x8xf32>
    %98 = vector.extract_strided_slice %31 {offsets = [0, 24], sizes = [8, 8], strides = [1, 1]} : vector<8x128xf32> to vector<8x8xf32>
    %99 = vector.shape_cast %98 : vector<8x8xf32> to vector<1x8x8xf32>
    "tpu.trace_start"() <{level = 10 : i32, message = "bqd,bkd->bqk"}> : () -> ()
    %cst_32 = arith.constant dense<0.000000e+00> : vector<1x8x8xf32>
    %100 = tpu.matmul %95, %97, %cst_32 {dimension_numbers = #tpu.dot_dimension_numbers<[2], [2], [1], [1], [0, 0, 0, 1, 1, 1], [0], [0]>} : vector<1x8x8xf32>, vector<1x8x8xf32>, vector<1x8x8xf32> -> vector<1x8x8xf32>
    "tpu.trace_stop"() : () -> ()
    %cst_33 = arith.constant dense<0xFF800000> : vector<1x8xf32>
    %101 = vector.multi_reduction <maximumf>, %100, %cst_33 [2] : vector<1x8x8xf32> to vector<1x8xf32>
    %102 = vector.shape_cast %101 : vector<1x8xf32> to vector<1x8x1xf32>
    %103 = vector.broadcast %102 : vector<1x8x1xf32> to vector<1x8x8xf32>
    %104 = arith.subf %100, %103 : vector<1x8x8xf32>
    %105 = math.exp %104 : vector<1x8x8xf32>
    %cst_34 = arith.constant dense<0.000000e+00> : vector<1x8xf32>
    %106 = vector.multi_reduction <add>, %105, %cst_34 [2] : vector<1x8x8xf32> to vector<1x8xf32>
    %107 = vector.shape_cast %106 : vector<1x8xf32> to vector<1x8x1xf32>
    "tpu.trace_start"() <{level = 10 : i32, message = "bqk,bkd->bqd"}> : () -> ()
    %cst_35 = arith.constant dense<0.000000e+00> : vector<1x8x8xf32>
    %108 = tpu.matmul %105, %99, %cst_35 {dimension_numbers = #tpu.dot_dimension_numbers<[2], [1], [1], [2], [0, 0, 0, 1, 1, 2], [0], [0]>} : vector<1x8x8xf32>, vector<1x8x8xf32>, vector<1x8x8xf32> -> vector<1x8x8xf32>
    "tpu.trace_stop"() : () -> ()
    %109 = tpu.reciprocal %107 : vector<1x8x1xf32> -> vector<1x8x1xf32>
    %110 = vector.broadcast %109 : vector<1x8x1xf32> to vector<1x8x8xf32>
    %111 = arith.mulf %108, %110 : vector<1x8x8xf32>
    %112 = vector.shape_cast %111 : vector<1x8x8xf32> to vector<8x8xf32>
    %c0_36 = arith.constant 0 : index
    %c24 = arith.constant 24 : index
    %113 = vector.load %arg13[%c0_36, %c24] : memref<8x128xf32, #tpu.memory_space<vmem>>, vector<8x8xf32>
    tpu.vector_store %arg13[%c0_36, %c24], %112 {strides = array<i32>} : memref<8x128xf32, #tpu.memory_space<vmem>>, vector<8x8xf32>,
    %c0_37 = arith.constant 0 : index
    %c0_38 = arith.constant 0 : index
    %114 = vector.load %arg13[%c0_37, %c0_38] : memref<8x128xf32, #tpu.memory_space<vmem>>, vector<8x128xf32>
    %c0_39 = arith.constant 0 : index
    %c0_40 = arith.constant 0 : index
    %115 = vector.load %arg3[%c0_39, %c0_40] : memref<128x128xf32, #tpu.memory_space<vmem>>, vector<128x128xf32>
    %cst_41 = arith.constant dense<0.000000e+00> : vector<8x128xf32>
    %116 = tpu.matmul %114, %115, %cst_41 {dimension_numbers = #tpu.dot_dimension_numbers<[1], [0], [0], [1], [0, 0, 1, 1], [], []>} : vector<8x128xf32>, vector<128x128xf32>, vector<8x128xf32> -> vector<8x128xf32>
    %117 = arith.addf %0, %116 : vector<8x128xf32>
    %c0_42 = arith.constant 0 : index
    %c0_43 = arith.constant 0 : index
    %118 = vector.load %arg10[%c0_42, %c0_43] : memref<1x128xf32, #tpu.memory_space<vmem>>, vector<1x128xf32>
    %c0_44 = arith.constant 0 : index
    %c0_45 = arith.constant 0 : index
    %119 = vector.load %arg11[%c0_44, %c0_45] : memref<1x128xf32, #tpu.memory_space<vmem>>, vector<1x128xf32>
    %cst_46 = arith.constant dense<0.000000e+00> : vector<8xf32>
    %120 = vector.multi_reduction <add>, %117, %cst_46 [1] : vector<8x128xf32> to vector<8xf32>
    %121 = vector.shape_cast %120 : vector<8xf32> to vector<8x1xf32>
    %cst_47 = arith.constant 3.125000e-02 : f32
    %122 = vector.broadcast %cst_47 : f32 to vector<8x1xf32>
    %123 = arith.mulf %121, %122 : vector<8x1xf32>
    %124 = arith.mulf %117, %117 : vector<8x128xf32>
    %cst_48 = arith.constant dense<0.000000e+00> : vector<8xf32>
    %125 = vector.multi_reduction <add>, %124, %cst_48 [1] : vector<8x128xf32> to vector<8xf32>
    %126 = vector.shape_cast %125 : vector<8xf32> to vector<8x1xf32>
    %cst_49 = arith.constant 3.125000e-02 : f32
    %127 = vector.broadcast %cst_49 : f32 to vector<8x1xf32>
    %128 = arith.mulf %126, %127 : vector<8x1xf32>
    %129 = arith.mulf %123, %123 : vector<8x1xf32>
    %130 = arith.subf %128, %129 : vector<8x1xf32>
    %131 = vector.broadcast %123 : vector<8x1xf32> to vector<8x128xf32>
    %132 = arith.subf %117, %131 : vector<8x128xf32>
    %cst_50 = arith.constant 9.99999974E-6 : f32
    %133 = vector.broadcast %cst_50 : f32 to vector<8x1xf32>
    %134 = arith.addf %130, %133 : vector<8x1xf32>
    %135 = math.rsqrt %134 : vector<8x1xf32>
    %136 = vector.broadcast %135 : vector<8x1xf32> to vector<8x128xf32>
    %137 = arith.mulf %132, %136 : vector<8x128xf32>
    %138 = vector.broadcast %118 : vector<1x128xf32> to vector<8x128xf32>
    %139 = arith.mulf %137, %138 : vector<8x128xf32>
    %140 = vector.broadcast %119 : vector<1x128xf32> to vector<8x128xf32>
    %141 = arith.addf %139, %140 : vector<8x128xf32>
    %c0_51 = arith.constant 0 : index
    %c0_52 = arith.constant 0 : index
    %142 = vector.load %arg4[%c0_51, %c0_52] : memref<128x128xf32, #tpu.memory_space<vmem>>, vector<128x128xf32>
    %cst_53 = arith.constant dense<0.000000e+00> : vector<8x128xf32>
    %143 = tpu.matmul %141, %142, %cst_53 {dimension_numbers = #tpu.dot_dimension_numbers<[1], [0], [0], [1], [0, 0, 1, 1], [], []>} : vector<8x128xf32>, vector<128x128xf32>, vector<8x128xf32> -> vector<8x128xf32>
    %c0_54 = arith.constant 0 : index
    %c0_55 = arith.constant 0 : index
    %144 = vector.load %arg5[%c0_54, %c0_55] : memref<1x128xf32, #tpu.memory_space<vmem>>, vector<1x128xf32>
    %145 = vector.broadcast %144 : vector<1x128xf32> to vector<8x128xf32>
    %146 = arith.addf %143, %145 : vector<8x128xf32>
    %cst_56 = arith.constant 0.000000e+00 : f32
    %147 = vector.broadcast %cst_56 : f32 to vector<8x128xf32>
    %148 = arith.maximumf %146, %147 : vector<8x128xf32>
    %c0_57 = arith.constant 0 : index
    %c0_58 = arith.constant 0 : index
    %149 = vector.load %arg6[%c0_57, %c0_58] : memref<128x128xf32, #tpu.memory_space<vmem>>, vector<128x128xf32>
    %cst_59 = arith.constant dense<0.000000e+00> : vector<8x128xf32>
    %150 = tpu.matmul %148, %149, %cst_59 {dimension_numbers = #tpu.dot_dimension_numbers<[1], [0], [0], [1], [0, 0, 1, 1], [], []>} : vector<8x128xf32>, vector<128x128xf32>, vector<8x128xf32> -> vector<8x128xf32>
    %c0_60 = arith.constant 0 : index
    %c0_61 = arith.constant 0 : index
    %151 = vector.load %arg7[%c0_60, %c0_61] : memref<1x128xf32, #tpu.memory_space<vmem>>, vector<1x128xf32>
    %152 = vector.broadcast %151 : vector<1x128xf32> to vector<8x128xf32>
    %153 = arith.addf %150, %152 : vector<8x128xf32>
    %154 = arith.addf %117, %153 : vector<8x128xf32>
    %c0_62 = arith.constant 0 : index
    %c0_63 = arith.constant 0 : index
    %155 = vector.load %arg12[%c0_62, %c0_63] : memref<8x128xf32, #tpu.memory_space<vmem>>, vector<8x128xf32>
    tpu.vector_store %arg12[%c0_62, %c0_63], %154 {strides = array<i32>} : memref<8x128xf32, #tpu.memory_space<vmem>>, vector<8x128xf32>,
    return
  }
  func.func @transform_0(%arg0: i32) -> (i32, i32) {
    %c0_i32 = arith.constant 0 : i32
    %c0_i32_0 = arith.constant 0 : i32
    return %arg0, %c0_i32 : i32, i32
  }
  func.func @transform_1(%arg0: i32) -> (i32, i32) {
    %c0_i32 = arith.constant 0 : i32
    %c0_i32_0 = arith.constant 0 : i32
    %c0_i32_1 = arith.constant 0 : i32
    return %c0_i32, %c0_i32_0 : i32, i32
  }
  func.func @transform_2(%arg0: i32) -> (i32, i32) {
    %c0_i32 = arith.constant 0 : i32
    %c0_i32_0 = arith.constant 0 : i32
    %c0_i32_1 = arith.constant 0 : i32
    return %c0_i32, %c0_i32_0 : i32, i32
  }
  func.func @transform_3(%arg0: i32) -> (i32, i32) {
    %c0_i32 = arith.constant 0 : i32
    %c0_i32_0 = arith.constant 0 : i32
    %c0_i32_1 = arith.constant 0 : i32
    return %c0_i32, %c0_i32_0 : i32, i32
  }
  func.func @transform_4(%arg0: i32) -> (i32, i32) {
    %c0_i32 = arith.constant 0 : i32
    %c0_i32_0 = arith.constant 0 : i32
    %c0_i32_1 = arith.constant 0 : i32
    return %c0_i32, %c0_i32_0 : i32, i32
  }
  func.func @transform_5(%arg0: i32) -> (i32, i32) {
    %c0_i32 = arith.constant 0 : i32
    %c0_i32_0 = arith.constant 0 : i32
    %c0_i32_1 = arith.constant 0 : i32
    return %c0_i32, %c0_i32_0 : i32, i32
  }
  func.func @transform_6(%arg0: i32) -> (i32, i32) {
    %c0_i32 = arith.constant 0 : i32
    %c0_i32_0 = arith.constant 0 : i32
    %c0_i32_1 = arith.constant 0 : i32
    return %c0_i32, %c0_i32_0 : i32, i32
  }
  func.func @transform_7(%arg0: i32) -> (i32, i32) {
    %c0_i32 = arith.constant 0 : i32
    %c0_i32_0 = arith.constant 0 : i32
    %c0_i32_1 = arith.constant 0 : i32
    return %c0_i32, %c0_i32_0 : i32, i32
  }
  func.func @transform_8(%arg0: i32) -> (i32, i32) {
    %c0_i32 = arith.constant 0 : i32
    %c0_i32_0 = arith.constant 0 : i32
    %c0_i32_1 = arith.constant 0 : i32
    return %c0_i32, %c0_i32_0 : i32, i32
  }
  func.func @transform_9(%arg0: i32) -> (i32, i32) {
    %c0_i32 = arith.constant 0 : i32
    %c0_i32_0 = arith.constant 0 : i32
    %c0_i32_1 = arith.constant 0 : i32
    return %c0_i32, %c0_i32_0 : i32, i32
  }
  func.func @transform_10(%arg0: i32) -> (i32, i32) {
    %c0_i32 = arith.constant 0 : i32
    %c0_i32_0 = arith.constant 0 : i32
    %c0_i32_1 = arith.constant 0 : i32
    return %c0_i32, %c0_i32_0 : i32, i32
  }
  func.func @transform_11(%arg0: i32) -> (i32, i32) {
    %c0_i32 = arith.constant 0 : i32
    %c0_i32_0 = arith.constant 0 : i32
    return %arg0, %c0_i32 : i32, i32
  }
}

module attributes {stable_mosaic.version = 11 : i64} {
  func.func @encoder_block_kernel(%arg0: i32, %arg1: memref<8x128xf32, #tpu.memory_space<vmem>>, %arg2: memref<128x384xf32, #tpu.memory_space<vmem>>, %arg3: memref<128x128xf32, #tpu.memory_space<vmem>>, %arg4: memref<128x128xf32, #tpu.memory_space<vmem>>, %arg5: memref<1x128xf32, #tpu.memory_space<vmem>>, %arg6: memref<128x128xf32, #tpu.memory_space<vmem>>, %arg7: memref<1x128xf32, #tpu.memory_space<vmem>>, %arg8: memref<1x128xf32, #tpu.memory_space<vmem>>, %arg9: memref<1x128xf32, #tpu.memory_space<vmem>>, %arg10: memref<1x128xf32, #tpu.memory_space<vmem>>, %arg11: memref<1x128xf32, #tpu.memory_space<vmem>>, %arg12: memref<8x128xf32, #tpu.memory_space<vmem>>, %arg13: memref<8x128xf32, #tpu.memory_space<vmem>>) attributes {dimension_semantics = [#tpu.dimension_semantics<parallel>], iteration_bounds = array<i64: 2>, scalar_prefetch = 0 : i64, scratch_operands = 1 : i64, tpu.core_type = #tpu.core_type<tc>, window_params = [{transform_indices = @transform_0, window_bounds = array<i64: 8, 128>}, {pipeline_mode = #tpu.pipeline_mode<synchronous>, transform_indices = @transform_1, window_bounds = array<i64: 128, 384>}, {pipeline_mode = #tpu.pipeline_mode<synchronous>, transform_indices = @transform_2, window_bounds = array<i64: 128, 128>}, {pipeline_mode = #tpu.pipeline_mode<synchronous>, transform_indices = @transform_3, window_bounds = array<i64: 128, 128>}, {pipeline_mode = #tpu.pipeline_mode<synchronous>, transform_indices = @transform_4, window_bounds = array<i64: 1, 128>}, {pipeline_mode = #tpu.pipeline_mode<synchronous>, transform_indices = @transform_5, window_bounds = array<i64: 128, 128>}, {pipeline_mode = #tpu.pipeline_mode<synchronous>, transform_indices = @transform_6, window_bounds = array<i64: 1, 128>}, {pipeline_mode = #tpu.pipeline_mode<synchronous>, transform_indices = @transform_7, window_bounds = array<i64: 1, 128>}, {pipeline_mode = #tpu.pipeline_mode<synchronous>, transform_indices = @transform_8, window_bounds = array<i64: 1, 128>}, {pipeline_mode = #tpu.pipeline_mode<synchronous>, transform_indices = @transform_9, window_bounds = array<i64: 1, 128>}, {pipeline_mode = #tpu.pipeline_mode<synchronous>, transform_indices = @transform_10, window_bounds = array<i64: 1, 128>}, {transform_indices = @transform_11, window_bounds = array<i64: 8, 128>}]} {
    %c0 = arith.constant 0 : index
    %c0_0 = arith.constant 0 : index
    %0 = vector.load %arg1[%c0, %c0_0] : memref<8x128xf32, #tpu.memory_space<vmem>>, vector<8x128xf32>
    %c0_1 = arith.constant 0 : index
    %c0_2 = arith.constant 0 : index
    %1 = vector.load %arg8[%c0_1, %c0_2] : memref<1x128xf32, #tpu.memory_space<vmem>>, vector<1x128xf32>
    %c0_3 = arith.constant 0 : index
    %c0_4 = arith.constant 0 : index
    %2 = vector.load %arg9[%c0_3, %c0_4] : memref<1x128xf32, #tpu.memory_space<vmem>>, vector<1x128xf32>
    %cst = arith.constant dense<0.000000e+00> : vector<8xf32>
    %3 = vector.multi_reduction <add>, %0, %cst [1] : vector<8x128xf32> to vector<8xf32>
    %4 = vector.shape_cast %3 : vector<8xf32> to vector<8x1xf32>
    %cst_5 = arith.constant 3.125000e-02 : f32
    %5 = vector.broadcast %cst_5 : f32 to vector<8x1xf32>
    %6 = arith.mulf %4, %5 : vector<8x1xf32>
    %7 = arith.mulf %0, %0 : vector<8x128xf32>
    %cst_6 = arith.constant dense<0.000000e+00> : vector<8xf32>
    %8 = vector.multi_reduction <add>, %7, %cst_6 [1] : vector<8x128xf32> to vector<8xf32>
    %9 = vector.shape_cast %8 : vector<8xf32> to vector<8x1xf32>
    %cst_7 = arith.constant 3.125000e-02 : f32
    %10 = vector.broadcast %cst_7 : f32 to vector<8x1xf32>
    %11 = arith.mulf %9, %10 : vector<8x1xf32>
    %12 = arith.mulf %6, %6 : vector<8x1xf32>
    %13 = arith.subf %11, %12 : vector<8x1xf32>
    %14 = vector.broadcast %6 : vector<8x1xf32> to vector<8x128xf32>
    %15 = arith.subf %0, %14 : vector<8x128xf32>
    %cst_8 = arith.constant 9.99999974E-6 : f32
    %16 = vector.broadcast %cst_8 : f32 to vector<8x1xf32>
    %17 = arith.addf %13, %16 : vector<8x1xf32>
    %18 = math.rsqrt %17 : vector<8x1xf32>
    %19 = vector.broadcast %18 : vector<8x1xf32> to vector<8x128xf32>
    %20 = arith.mulf %15, %19 : vector<8x128xf32>
    %21 = vector.broadcast %1 : vector<1x128xf32> to vector<8x128xf32>
    %22 = arith.mulf %20, %21 : vector<8x128xf32>
    %23 = vector.broadcast %2 : vector<1x128xf32> to vector<8x128xf32>
    %24 = arith.addf %22, %23 : vector<8x128xf32>
    %c0_9 = arith.constant 0 : index
    %c0_10 = arith.constant 0 : index
    %25 = vector.load %arg2[%c0_9, %c0_10] : memref<128x384xf32, #tpu.memory_space<vmem>>, vector<128x384xf32>
    %cst_11 = arith.constant dense<0.000000e+00> : vector<8x384xf32>
    %26 = tpu.matmul %24, %25, %cst_11 {dimension_numbers = #tpu.dot_dimension_numbers<[1], [0], [0], [1], [0, 0, 1, 1], [], []>} : vector<8x128xf32>, vector<128x384xf32>, vector<8x384xf32> -> vector<8x384xf32>
    %27 = vector.extract_strided_slice %26 {offsets = [0, 0], sizes = [8, 128], strides = [1, 1]} : vector<8x384xf32> to vector<8x128xf32>
    %cst_12 = arith.constant 0.353553385 : f32
    %28 = vector.broadcast %cst_12 : f32 to vector<8x128xf32>
    %29 = arith.mulf %27, %28 : vector<8x128xf32>
    %30 = vector.extract_strided_slice %26 {offsets = [0, 128], sizes = [8, 128], strides = [1, 1]} : vector<8x384xf32> to vector<8x128xf32>
    %31 = vector.extract_strided_slice %26 {offsets = [0, 256], sizes = [8, 128], strides = [1, 1]} : vector<8x384xf32> to vector<8x128xf32>
    %cst_13 = arith.constant 0.000000e+00 : f32
    %32 = vector.broadcast %cst_13 : f32 to vector<8x128xf32>
    %c0_14 = arith.constant 0 : index
    %c0_15 = arith.constant 0 : index
    %33 = vector.load %arg13[%c0_14, %c0_15] : memref<8x128xf32, #tpu.memory_space<vmem>>, vector<8x128xf32>
    tpu.vector_store %arg13[%c0_14, %c0_15], %32 {strides = array<i32>} : memref<8x128xf32, #tpu.memory_space<vmem>>, vector<8x128xf32>,
    %34 = vector.extract_strided_slice %29 {offsets = [0, 0], sizes = [8, 8], strides = [1, 1]} : vector<8x128xf32> to vector<8x8xf32>
    %35 = vector.shape_cast %34 : vector<8x8xf32> to vector<1x8x8xf32>
    %36 = vector.extract_strided_slice %30 {offsets = [0, 0], sizes = [8, 8], strides = [1, 1]} : vector<8x128xf32> to vector<8x8xf32>
    %37 = vector.shape_cast %36 : vector<8x8xf32> to vector<1x8x8xf32>
    %38 = vector.extract_strided_slice %31 {offsets = [0, 0], sizes = [8, 8], strides = [1, 1]} : vector<8x128xf32> to vector<8x8xf32>
    %39 = vector.shape_cast %38 : vector<8x8xf32> to vector<1x8x8xf32>
    "tpu.trace_start"() <{level = 10 : i32, message = "bqd,bkd->bqk"}> : () -> ()
    %cst_16 = arith.constant dense<0.000000e+00> : vector<1x8x8xf32>
    %40 = tpu.matmul %35, %37, %cst_16 {dimension_numbers = #tpu.dot_dimension_numbers<[2], [2], [1], [1], [0, 0, 0, 1, 1, 1], [0], [0]>} : vector<1x8x8xf32>, vector<1x8x8xf32>, vector<1x8x8xf32> -> vector<1x8x8xf32>
    "tpu.trace_stop"() : () -> ()
    %cst_17 = arith.constant dense<0xFF800000> : vector<1x8xf32>
    %41 = vector.multi_reduction <maximumf>, %40, %cst_17 [2] : vector<1x8x8xf32> to vector<1x8xf32>
    %42 = vector.shape_cast %41 : vector<1x8xf32> to vector<1x8x1xf32>
    %43 = vector.broadcast %42 : vector<1x8x1xf32> to vector<1x8x8xf32>
    %44 = arith.subf %40, %43 : vector<1x8x8xf32>
    %45 = math.exp %44 : vector<1x8x8xf32>
    %cst_18 = arith.constant dense<0.000000e+00> : vector<1x8xf32>
    %46 = vector.multi_reduction <add>, %45, %cst_18 [2] : vector<1x8x8xf32> to vector<1x8xf32>
    %47 = vector.shape_cast %46 : vector<1x8xf32> to vector<1x8x1xf32>
    "tpu.trace_start"() <{level = 10 : i32, message = "bqk,bkd->bqd"}> : () -> ()
    %cst_19 = arith.constant dense<0.000000e+00> : vector<1x8x8xf32>
    %48 = tpu.matmul %45, %39, %cst_19 {dimension_numbers = #tpu.dot_dimension_numbers<[2], [1], [1], [2], [0, 0, 0, 1, 1, 2], [0], [0]>} : vector<1x8x8xf32>, vector<1x8x8xf32>, vector<1x8x8xf32> -> vector<1x8x8xf32>
    "tpu.trace_stop"() : () -> ()
    %49 = tpu.reciprocal %47 : vector<1x8x1xf32> -> vector<1x8x1xf32>
    %50 = vector.broadcast %49 : vector<1x8x1xf32> to vector<1x8x8xf32>
    %51 = arith.mulf %48, %50 : vector<1x8x8xf32>
    %52 = vector.shape_cast %51 : vector<1x8x8xf32> to vector<8x8xf32>
    %c0_20 = arith.constant 0 : index
    %c0_21 = arith.constant 0 : index
    %53 = vector.load %arg13[%c0_20, %c0_21] : memref<8x128xf32, #tpu.memory_space<vmem>>, vector<8x8xf32>
    tpu.vector_store %arg13[%c0_20, %c0_21], %52 {strides = array<i32>} : memref<8x128xf32, #tpu.memory_space<vmem>>, vector<8x8xf32>,
    %54 = vector.extract_strided_slice %29 {offsets = [0, 8], sizes = [8, 8], strides = [1, 1]} : vector<8x128xf32> to vector<8x8xf32>
    %55 = vector.shape_cast %54 : vector<8x8xf32> to vector<1x8x8xf32>
    %56 = vector.extract_strided_slice %30 {offsets = [0, 8], sizes = [8, 8], strides = [1, 1]} : vector<8x128xf32> to vector<8x8xf32>
    %57 = vector.shape_cast %56 : vector<8x8xf32> to vector<1x8x8xf32>
    %58 = vector.extract_strided_slice %31 {offsets = [0, 8], sizes = [8, 8], strides = [1, 1]} : vector<8x128xf32> to vector<8x8xf32>
    %59 = vector.shape_cast %58 : vector<8x8xf32> to vector<1x8x8xf32>
    "tpu.trace_start"() <{level = 10 : i32, message = "bqd,bkd->bqk"}> : () -> ()
    %cst_22 = arith.constant dense<0.000000e+00> : vector<1x8x8xf32>
    %60 = tpu.matmul %55, %57, %cst_22 {dimension_numbers = #tpu.dot_dimension_numbers<[2], [2], [1], [1], [0, 0, 0, 1, 1, 1], [0], [0]>} : vector<1x8x8xf32>, vector<1x8x8xf32>, vector<1x8x8xf32> -> vector<1x8x8xf32>
    "tpu.trace_stop"() : () -> ()
    %cst_23 = arith.constant dense<0xFF800000> : vector<1x8xf32>
    %61 = vector.multi_reduction <maximumf>, %60, %cst_23 [2] : vector<1x8x8xf32> to vector<1x8xf32>
    %62 = vector.shape_cast %61 : vector<1x8xf32> to vector<1x8x1xf32>
    %63 = vector.broadcast %62 : vector<1x8x1xf32> to vector<1x8x8xf32>
    %64 = arith.subf %60, %63 : vector<1x8x8xf32>
    %65 = math.exp %64 : vector<1x8x8xf32>
    %cst_24 = arith.constant dense<0.000000e+00> : vector<1x8xf32>
    %66 = vector.multi_reduction <add>, %65, %cst_24 [2] : vector<1x8x8xf32> to vector<1x8xf32>
    %67 = vector.shape_cast %66 : vector<1x8xf32> to vector<1x8x1xf32>
    "tpu.trace_start"() <{level = 10 : i32, message = "bqk,bkd->bqd"}> : () -> ()
    %cst_25 = arith.constant dense<0.000000e+00> : vector<1x8x8xf32>
    %68 = tpu.matmul %65, %59, %cst_25 {dimension_numbers = #tpu.dot_dimension_numbers<[2], [1], [1], [2], [0, 0, 0, 1, 1, 2], [0], [0]>} : vector<1x8x8xf32>, vector<1x8x8xf32>, vector<1x8x8xf32> -> vector<1x8x8xf32>
    "tpu.trace_stop"() : () -> ()
    %69 = tpu.reciprocal %67 : vector<1x8x1xf32> -> vector<1x8x1xf32>
    %70 = vector.broadcast %69 : vector<1x8x1xf32> to vector<1x8x8xf32>
    %71 = arith.mulf %68, %70 : vector<1x8x8xf32>
    %72 = vector.shape_cast %71 : vector<1x8x8xf32> to vector<8x8xf32>
    %c0_26 = arith.constant 0 : index
    %c8 = arith.constant 8 : index
    %73 = vector.load %arg13[%c0_26, %c8] : memref<8x128xf32, #tpu.memory_space<vmem>>, vector<8x8xf32>
    tpu.vector_store %arg13[%c0_26, %c8], %72 {strides = array<i32>} : memref<8x128xf32, #tpu.memory_space<vmem>>, vector<8x8xf32>,
    %74 = vector.extract_strided_slice %29 {offsets = [0, 16], sizes = [8, 8], strides = [1, 1]} : vector<8x128xf32> to vector<8x8xf32>
    %75 = vector.shape_cast %74 : vector<8x8xf32> to vector<1x8x8xf32>
    %76 = vector.extract_strided_slice %30 {offsets = [0, 16], sizes = [8, 8], strides = [1, 1]} : vector<8x128xf32> to vector<8x8xf32>
    %77 = vector.shape_cast %76 : vector<8x8xf32> to vector<1x8x8xf32>
    %78 = vector.extract_strided_slice %31 {offsets = [0, 16], sizes = [8, 8], strides = [1, 1]} : vector<8x128xf32> to vector<8x8xf32>
    %79 = vector.shape_cast %78 : vector<8x8xf32> to vector<1x8x8xf32>
    "tpu.trace_start"() <{level = 10 : i32, message = "bqd,bkd->bqk"}> : () -> ()
    %cst_27 = arith.constant dense<0.000000e+00> : vector<1x8x8xf32>
    %80 = tpu.matmul %75, %77, %cst_27 {dimension_numbers = #tpu.dot_dimension_numbers<[2], [2], [1], [1], [0, 0, 0, 1, 1, 1], [0], [0]>} : vector<1x8x8xf32>, vector<1x8x8xf32>, vector<1x8x8xf32> -> vector<1x8x8xf32>
    "tpu.trace_stop"() : () -> ()
    %cst_28 = arith.constant dense<0xFF800000> : vector<1x8xf32>
    %81 = vector.multi_reduction <maximumf>, %80, %cst_28 [2] : vector<1x8x8xf32> to vector<1x8xf32>
    %82 = vector.shape_cast %81 : vector<1x8xf32> to vector<1x8x1xf32>
    %83 = vector.broadcast %82 : vector<1x8x1xf32> to vector<1x8x8xf32>
    %84 = arith.subf %80, %83 : vector<1x8x8xf32>
    %85 = math.exp %84 : vector<1x8x8xf32>
    %cst_29 = arith.constant dense<0.000000e+00> : vector<1x8xf32>
    %86 = vector.multi_reduction <add>, %85, %cst_29 [2] : vector<1x8x8xf32> to vector<1x8xf32>
    %87 = vector.shape_cast %86 : vector<1x8xf32> to vector<1x8x1xf32>
    "tpu.trace_start"() <{level = 10 : i32, message = "bqk,bkd->bqd"}> : () -> ()
    %cst_30 = arith.constant dense<0.000000e+00> : vector<1x8x8xf32>
    %88 = tpu.matmul %85, %79, %cst_30 {dimension_numbers = #tpu.dot_dimension_numbers<[2], [1], [1], [2], [0, 0, 0, 1, 1, 2], [0], [0]>} : vector<1x8x8xf32>, vector<1x8x8xf32>, vector<1x8x8xf32> -> vector<1x8x8xf32>
    "tpu.trace_stop"() : () -> ()
    %89 = tpu.reciprocal %87 : vector<1x8x1xf32> -> vector<1x8x1xf32>
    %90 = vector.broadcast %89 : vector<1x8x1xf32> to vector<1x8x8xf32>
    %91 = arith.mulf %88, %90 : vector<1x8x8xf32>
    %92 = vector.shape_cast %91 : vector<1x8x8xf32> to vector<8x8xf32>
    %c0_31 = arith.constant 0 : index
    %c16 = arith.constant 16 : index
    %93 = vector.load %arg13[%c0_31, %c16] : memref<8x128xf32, #tpu.memory_space<vmem>>, vector<8x8xf32>
    tpu.vector_store %arg13[%c0_31, %c16], %92 {strides = array<i32>} : memref<8x128xf32, #tpu.memory_space<vmem>>, vector<8x8xf32>,
    %94 = vector.extract_strided_slice %29 {offsets = [0, 24], sizes = [8, 8], strides = [1, 1]} : vector<8x128xf32> to vector<8x8xf32>
    %95 = vector.shape_cast %94 : vector<8x8xf32> to vector<1x8x8xf32>
    %96 = vector.extract_strided_slice %30 {offsets = [0, 24], sizes = [8, 8], strides = [1, 1]} : vector<8x128xf32> to vector<8x8xf32>
    %97 = vector.shape_cast %96 : vector<8x8xf32> to vector<1x8x8xf32>
    %98 = vector.extract_strided_slice %31 {offsets = [0, 24], sizes = [8, 8], strides = [1, 1]} : vector<8x128xf32> to vector<8x8xf32>
    %99 = vector.shape_cast %98 : vector<8x8xf32> to vector<1x8x8xf32>
    "tpu.trace_start"() <{level = 10 : i32, message = "bqd,bkd->bqk"}> : () -> ()
    %cst_32 = arith.constant dense<0.000000e+00> : vector<1x8x8xf32>
    %100 = tpu.matmul %95, %97, %cst_32 {dimension_numbers = #tpu.dot_dimension_numbers<[2], [2], [1], [1], [0, 0, 0, 1, 1, 1], [0], [0]>} : vector<1x8x8xf32>, vector<1x8x8xf32>, vector<1x8x8xf32> -> vector<1x8x8xf32>
    "tpu.trace_stop"() : () -> ()
    %cst_33 = arith.constant dense<0xFF800000> : vector<1x8xf32>
    %101 = vector.multi_reduction <maximumf>, %100, %cst_33 [2] : vector<1x8x8xf32> to vector<1x8xf32>
    %102 = vector.shape_cast %101 : vector<1x8xf32> to vector<1x8x1xf32>
    %103 = vector.broadcast %102 : vector<1x8x1xf32> to vector<1x8x8xf32>
    %104 = arith.subf %100, %103 : vector<1x8x8xf32>
    %105 = math.exp %104 : vector<1x8x8xf32>
    %cst_34 = arith.constant dense<0.000000e+00> : vector<1x8xf32>
    %106 = vector.multi_reduction <add>, %105, %cst_34 [2] : vector<1x8x8xf32> to vector<1x8xf32>
    %107 = vector.shape_cast %106 : vector<1x8xf32> to vector<1x8x1xf32>
    "tpu.trace_start"() <{level = 10 : i32, message = "bqk,bkd->bqd"}> : () -> ()
    %cst_35 = arith.constant dense<0.000000e+00> : vector<1x8x8xf32>
    %108 = tpu.matmul %105, %99, %cst_35 {dimension_numbers = #tpu.dot_dimension_numbers<[2], [1], [1], [2], [0, 0, 0, 1, 1, 2], [0], [0]>} : vector<1x8x8xf32>, vector<1x8x8xf32>, vector<1x8x8xf32> -> vector<1x8x8xf32>
    "tpu.trace_stop"() : () -> ()
    %109 = tpu.reciprocal %107 : vector<1x8x1xf32> -> vector<1x8x1xf32>
    %110 = vector.broadcast %109 : vector<1x8x1xf32> to vector<1x8x8xf32>
    %111 = arith.mulf %108, %110 : vector<1x8x8xf32>
    %112 = vector.shape_cast %111 : vector<1x8x8xf32> to vector<8x8xf32>
    %c0_36 = arith.constant 0 : index
    %c24 = arith.constant 24 : index
    %113 = vector.load %arg13[%c0_36, %c24] : memref<8x128xf32, #tpu.memory_space<vmem>>, vector<8x8xf32>
    tpu.vector_store %arg13[%c0_36, %c24], %112 {strides = array<i32>} : memref<8x128xf32, #tpu.memory_space<vmem>>, vector<8x8xf32>,
    %c0_37 = arith.constant 0 : index
    %c0_38 = arith.constant 0 : index
    %114 = vector.load %arg13[%c0_37, %c0_38] : memref<8x128xf32, #tpu.memory_space<vmem>>, vector<8x128xf32>
    %c0_39 = arith.constant 0 : index
    %c0_40 = arith.constant 0 : index
    %115 = vector.load %arg3[%c0_39, %c0_40] : memref<128x128xf32, #tpu.memory_space<vmem>>, vector<128x128xf32>
    %cst_41 = arith.constant dense<0.000000e+00> : vector<8x128xf32>
    %116 = tpu.matmul %114, %115, %cst_41 {dimension_numbers = #tpu.dot_dimension_numbers<[1], [0], [0], [1], [0, 0, 1, 1], [], []>} : vector<8x128xf32>, vector<128x128xf32>, vector<8x128xf32> -> vector<8x128xf32>
    %117 = arith.addf %0, %116 : vector<8x128xf32>
    %c0_42 = arith.constant 0 : index
    %c0_43 = arith.constant 0 : index
    %118 = vector.load %arg10[%c0_42, %c0_43] : memref<1x128xf32, #tpu.memory_space<vmem>>, vector<1x128xf32>
    %c0_44 = arith.constant 0 : index
    %c0_45 = arith.constant 0 : index
    %119 = vector.load %arg11[%c0_44, %c0_45] : memref<1x128xf32, #tpu.memory_space<vmem>>, vector<1x128xf32>
    %cst_46 = arith.constant dense<0.000000e+00> : vector<8xf32>
    %120 = vector.multi_reduction <add>, %117, %cst_46 [1] : vector<8x128xf32> to vector<8xf32>
    %121 = vector.shape_cast %120 : vector<8xf32> to vector<8x1xf32>
    %cst_47 = arith.constant 3.125000e-02 : f32
    %122 = vector.broadcast %cst_47 : f32 to vector<8x1xf32>
    %123 = arith.mulf %121, %122 : vector<8x1xf32>
    %124 = arith.mulf %117, %117 : vector<8x128xf32>
    %cst_48 = arith.constant dense<0.000000e+00> : vector<8xf32>
    %125 = vector.multi_reduction <add>, %124, %cst_48 [1] : vector<8x128xf32> to vector<8xf32>
    %126 = vector.shape_cast %125 : vector<8xf32> to vector<8x1xf32>
    %cst_49 = arith.constant 3.125000e-02 : f32
    %127 = vector.broadcast %cst_49 : f32 to vector<8x1xf32>
    %128 = arith.mulf %126, %127 : vector<8x1xf32>
    %129 = arith.mulf %123, %123 : vector<8x1xf32>
    %130 = arith.subf %128, %129 : vector<8x1xf32>
    %131 = vector.broadcast %123 : vector<8x1xf32> to vector<8x128xf32>
    %132 = arith.subf %117, %131 : vector<8x128xf32>
    %cst_50 = arith.constant 9.99999974E-6 : f32
    %133 = vector.broadcast %cst_50 : f32 to vector<8x1xf32>
    %134 = arith.addf %130, %133 : vector<8x1xf32>
    %135 = math.rsqrt %134 : vector<8x1xf32>
    %136 = vector.broadcast %135 : vector<8x1xf32> to vector<8x128xf32>
    %137 = arith.mulf %132, %136 : vector<8x128xf32>
    %138 = vector.broadcast %118 : vector<1x128xf32> to vector<8x128xf32>
    %139 = arith.mulf %137, %138 : vector<8x128xf32>
    %140 = vector.broadcast %119 : vector<1x128xf32> to vector<8x128xf32>
    %141 = arith.addf %139, %140 : vector<8x128xf32>
    %c0_51 = arith.constant 0 : index
    %c0_52 = arith.constant 0 : index
    %142 = vector.load %arg4[%c0_51, %c0_52] : memref<128x128xf32, #tpu.memory_space<vmem>>, vector<128x128xf32>
    %cst_53 = arith.constant dense<0.000000e+00> : vector<8x128xf32>
    %143 = tpu.matmul %141, %142, %cst_53 {dimension_numbers = #tpu.dot_dimension_numbers<[1], [0], [0], [1], [0, 0, 1, 1], [], []>} : vector<8x128xf32>, vector<128x128xf32>, vector<8x128xf32> -> vector<8x128xf32>
    %c0_54 = arith.constant 0 : index
    %c0_55 = arith.constant 0 : index
    %144 = vector.load %arg5[%c0_54, %c0_55] : memref<1x128xf32, #tpu.memory_space<vmem>>, vector<1x128xf32>
    %145 = vector.broadcast %144 : vector<1x128xf32> to vector<8x128xf32>
    %146 = arith.addf %143, %145 : vector<8x128xf32>
    %cst_56 = arith.constant 0.000000e+00 : f32
    %147 = vector.broadcast %cst_56 : f32 to vector<8x128xf32>
    %148 = arith.maximumf %146, %147 : vector<8x128xf32>
    %c0_57 = arith.constant 0 : index
    %c0_58 = arith.constant 0 : index
    %149 = vector.load %arg6[%c0_57, %c0_58] : memref<128x128xf32, #tpu.memory_space<vmem>>, vector<128x128xf32>
    %cst_59 = arith.constant dense<0.000000e+00> : vector<8x128xf32>
    %150 = tpu.matmul %148, %149, %cst_59 {dimension_numbers = #tpu.dot_dimension_numbers<[1], [0], [0], [1], [0, 0, 1, 1], [], []>} : vector<8x128xf32>, vector<128x128xf32>, vector<8x128xf32> -> vector<8x128xf32>
    %c0_60 = arith.constant 0 : index
    %c0_61 = arith.constant 0 : index
    %151 = vector.load %arg7[%c0_60, %c0_61] : memref<1x128xf32, #tpu.memory_space<vmem>>, vector<1x128xf32>
    %152 = vector.broadcast %151 : vector<1x128xf32> to vector<8x128xf32>
    %153 = arith.addf %150, %152 : vector<8x128xf32>
    %154 = arith.addf %117, %153 : vector<8x128xf32>
    %c0_62 = arith.constant 0 : index
    %c0_63 = arith.constant 0 : index
    %155 = vector.load %arg12[%c0_62, %c0_63] : memref<8x128xf32, #tpu.memory_space<vmem>>, vector<8x128xf32>
    tpu.vector_store %arg12[%c0_62, %c0_63], %154 {strides = array<i32>} : memref<8x128xf32, #tpu.memory_space<vmem>>, vector<8x128xf32>,
    return
  }
  func.func @transform_0(%arg0: i32) -> (i32, i32) {
    %c0_i32 = arith.constant 0 : i32
    %c0_i32_0 = arith.constant 0 : i32
    return %arg0, %c0_i32 : i32, i32
  }
  func.func @transform_1(%arg0: i32) -> (i32, i32) {
    %c0_i32 = arith.constant 0 : i32
    %c0_i32_0 = arith.constant 0 : i32
    %c0_i32_1 = arith.constant 0 : i32
    return %c0_i32, %c0_i32_0 : i32, i32
  }
  func.func @transform_2(%arg0: i32) -> (i32, i32) {
    %c0_i32 = arith.constant 0 : i32
    %c0_i32_0 = arith.constant 0 : i32
    %c0_i32_1 = arith.constant 0 : i32
    return %c0_i32, %c0_i32_0 : i32, i32
  }
  func.func @transform_3(%arg0: i32) -> (i32, i32) {
    %c0_i32 = arith.constant 0 : i32
    %c0_i32_0 = arith.constant 0 : i32
    %c0_i32_1 = arith.constant 0 : i32
    return %c0_i32, %c0_i32_0 : i32, i32
  }
  func.func @transform_4(%arg0: i32) -> (i32, i32) {
    %c0_i32 = arith.constant 0 : i32
    %c0_i32_0 = arith.constant 0 : i32
    %c0_i32_1 = arith.constant 0 : i32
    return %c0_i32, %c0_i32_0 : i32, i32
  }
  func.func @transform_5(%arg0: i32) -> (i32, i32) {
    %c0_i32 = arith.constant 0 : i32
    %c0_i32_0 = arith.constant 0 : i32
    %c0_i32_1 = arith.constant 0 : i32
    return %c0_i32, %c0_i32_0 : i32, i32
  }
  func.func @transform_6(%arg0: i32) -> (i32, i32) {
    %c0_i32 = arith.constant 0 : i32
    %c0_i32_0 = arith.constant 0 : i32
    %c0_i32_1 = arith.constant 0 : i32
    return %c0_i32, %c0_i32_0 : i32, i32
  }
  func.func @transform_7(%arg0: i32) -> (i32, i32) {
    %c0_i32 = arith.constant 0 : i32
    %c0_i32_0 = arith.constant 0 : i32
    %c0_i32_1 = arith.constant 0 : i32
    return %c0_i32, %c0_i32_0 : i32, i32
  }
  func.func @transform_8(%arg0: i32) -> (i32, i32) {
    %c0_i32 = arith.constant 0 : i32
    %c0_i32_0 = arith.constant 0 : i32
    %c0_i32_1 = arith.constant 0 : i32
    return %c0_i32, %c0_i32_0 : i32, i32
  }
  func.func @transform_9(%arg0: i32) -> (i32, i32) {
    %c0_i32 = arith.constant 0 : i32
    %c0_i32_0 = arith.constant 0 : i32
    %c0_i32_1 = arith.constant 0 : i32
    return %c0_i32, %c0_i32_0 : i32, i32
  }
  func.func @transform_10(%arg0: i32) -> (i32, i32) {
    %c0_i32 = arith.constant 0 : i32
    %c0_i32_0 = arith.constant 0 : i32
    %c0_i32_1 = arith.constant 0 : i32
    return %c0_i32, %c0_i32_0 : i32, i32
  }
  func.func @transform_11(%arg0: i32) -> (i32, i32) {
    %c0_i32 = arith.constant 0 : i32
    %c0_i32_0 = arith.constant 0 : i32
    return %arg0, %c0_i32 : i32, i32
  }
}

</mosaic_0001>

<bundles_post_ra>
// kernel: tpu_custom_call.1
= control target key start
LH: loop header
LB: loop body
LE: loop exit
PB: predicated region body
PF: predicated region fallthrough
CT: control target
= control target key end

     0   :  { %s1906_s0 = inlined_call_operand.hbm [shape: f32[16,128], index: 0, kind: input, shape index: {}]   ;;  %s1907_s1 = inlined_call_operand.hbm [shape: f32[128,384], index: 1, kind: input, shape index: {}]   ;;  %s1908_s2 = inlined_call_operand.hbm [shape: f32[128,128], index: 2, kind: input, shape index: {}]   ;;  %s1909_s3 = inlined_call_operand.hbm [shape: f32[128,128], index: 3, kind: input, shape index: {}]   ;;  %s1910_s4 = inlined_call_operand.vmem [shape: f32[1,128], index: 4, kind: input, shape index: {}]   ;;  %s1911_s5 = inlined_call_operand.hbm [shape: f32[128,128], index: 5, kind: input, shape index: {}]   ;;  %s1912_s6 = inlined_call_operand.vmem [shape: f32[1,128], index: 6, kind: input, shape index: {}]   ;;  %s1913_s7 = inlined_call_operand.vmem [shape: f32[1,128], index: 7, kind: input, shape index: {}]   ;;  %s1914_s8 = inlined_call_operand.vmem [shape: f32[1,128], index: 8, kind: input, shape index: {}]   ;;  %s1915_s9 = inlined_call_operand.vmem [shape: f32[1,128], index: 9, kind: input, shape index: {}]   ;;  %s1916_s10 = inlined_call_operand.vmem [shape: f32[1,128], index: 10, kind: input, shape index: {}]   ;;  %s1917_s11 = inlined_call_operand.hbm [shape: f32[16,128], index: 11, kind: output, shape index: {}]  }
   0x1   :  { %1919 = sst [smem:[#allocation19_spill]] %s1907_s1 }
   0x2   :  { %1920 = sst [smem:[#allocation20_spill]] %s1908_s2 }
   0x3   :  { %1921 = sst [smem:[#allocation21_spill]] %s1909_s3 }
   0x4   :  { %1922 = sst [smem:[#allocation22_spill]] %s1911_s5 }
   0x5   :  { %16 = vsyncpa [#allocation4], 0 }
   0x6   :  { %18 = vsyncpa [#allocation4 + $0x1], 0 }
   0x7   :  { %19 = vsyncpa [#allocation7], 0 }
   0x8   :  { %20 = vsyncpa [#allocation10], 0 }
   0x9   :  { %21 = vsyncpa [#allocation5], 0 }
   0xa   :  { %23 = vsyncpa [#allocation5 + $0x1], 0  ;;  %s1675_s17 = smov 0   ;;  %s1677_s18 = smov 0  }
   0xb   :  { %s1679_s19 = smov 0   ;;  %s1681_s20 = smov 0  }
   0xc LB: > { %1923 = sst [smem:[#allocation17_spill]] %s1594_s19  ;;  %s1699_s24 = sadd.s32 4294967295, %s1598_s20   ;;  %s1598_s20 = sphi %s1681_s20, %s1941_s20   ;;  %s1594_s19 = sphi %s1679_s19, %s1938_s19   ;;  %s1590_s18 = sphi %s1677_s18, %s1940_s18   ;;  %s1586_s17 = sphi %s1675_s17, %s1939_s17  }
   0xd   : > { %s1924_s1 = sld [smem:[#allocation19_spill]]  ;;  %p1219_p0 = scmp.ge.s32.totalorder %s1598_s20, 1 }
   0xe   : > { %p50_p1 = scmp.eq.s32.totalorder %s1699_s24, 0  ;;  %p296_p2 = scmp.lt.s32.totalorder %s1598_s20, 3 }
   0xf   : > { %s1600_s26 = smov [#allocation6]   ;;  %s1927_s3 = sld [smem:[#allocation21_spill]] }
  0x10   : > { %p1704_p3 = pnand %p1219_p0, %p296_p2  ;;  %s309_s27 = sshll.u32 %s1600_s26, 4  ;;  %s310_s27 = int_to_ptr.vmem [resolvable:$true] %s309_s27 }
  0x11   : > { %s1601_s13 = smov 384   ;;  %s1602_s14 = smov 24  }
  0x12   : > { %p1270_p4 = pneg %p1704_p3  ;;  %s1603_s15 = smov [#allocation9]  }
  0x13   : > { %s307_s23 = sshll.u32 %s1924_s1, 4  ;;  %s337_s16 = sshll.u32 %s1603_s15, 4  ;;  %s308_s23 = int_to_ptr.hbm [resolvable:$true] %s307_s23  ;;  %s338_s16 = int_to_ptr.vmem [resolvable:$true] %s337_s16 }
  0x14   : > { %p1713_p6 = pnand %p1270_p4, %p50_p1  ;;  %s1928_s2 = sld [smem:[#allocation20_spill]] }
  0x15   : > { %s335_s12 = sshll.u32 %s1927_s3, 4  ;;  %s1604_s29 = smov 128   ;;  %s336_s12 = int_to_ptr.hbm [resolvable:$true] %s335_s12 }
  0x16   : > { %1273 = dma.hbm_to_vmem [thread:$0]  (!%p1713_p6), %s308_s23, 6144, %s310_s27, [#allocation7], %s1601_s13, %s1601_s13, %s1602_s14  }
  0x17   : > { %s1605_s30 = smov 8   ;;  %s1929_s5 = sld [smem:[#allocation22_spill]] }
  0x18   : > { %1279 = dma.hbm_to_vmem [thread:$0]  (!%p1713_p6), %s336_s12, 2048, %s338_s16, [#allocation10], %s1604_s29, %s1604_s29, %s1605_s30  }
  0x19   : > { %s1606_s27 = smov [#allocation8]   ;;  %s1607_s14 = smov [#allocation11]  }
  0x1a   : > { %s321_s26 = sshll.u32 %s1928_s2, 4  ;;  %s323_s13 = sshll.u32 %s1606_s27, 4  ;;  %s322_s26 = int_to_ptr.hbm [resolvable:$true] %s321_s26  ;;  %s324_s13 = int_to_ptr.vmem [resolvable:$true] %s323_s13 }
  0x1b   : > { %1276 = dma.hbm_to_vmem [thread:$0]  (!%p1713_p6), %s322_s26, 2048, %s324_s13, [#allocation7], %s1604_s29, %s1604_s29, %s1605_s30  }
  0x1c   : > { %s354_s12 = sshll.u32 %s1607_s14, 4  ;;  %s1218_s1 = sadd.s32 4294967294, %s1598_s20   ;;  %s355_s12 = int_to_ptr.vmem [resolvable:$true] %s354_s12 }
  0x1d   : > { %s352_s23 = sshll.u32 %s1929_s5, 4  ;;  %s1736_s3 = sadd.s32 1, %s1598_s20   ;;  %s353_s23 = int_to_ptr.hbm [resolvable:$true] %s352_s23 }
  0x1e   : > { %1282 = dma.hbm_to_vmem [thread:$0]  (!%p1713_p6), %s353_s23, 2048, %s355_s12, [#allocation10], %s1604_s29, %s1604_s29, %s1605_s30  }
  0x1f   : > { %s33_s15 = ssub.s32 %s1598_s20, %s1736_s3  ;;  %s36_s16 = sadd.s32 1, %s1594_s19 }
  0x20   : > { %p34_p7 = scmp.eq.s32.totalorder %s33_s15, 0  ;;  %p43_p8 = scmp.ne.s32.totalorder %s1594_s19, %s1590_s18 }
  0x21   : > { %p44_p9 = scmp.eq.s32.totalorder %s1598_s20, 0  ;;  %p49_p10 = scmp.ne.s32.totalorder %s1590_s18, %s1586_s17 }
  0x22   : > { %s1747_s21 = scalar_select %p34_p7, %s1594_s19, %s36_s16  }
  0x23   : > { %p1749_p11 = por %p44_p9, %p43_p8  ;;  %p1755_p12 = por %p50_p1, %p49_p10 }
  0x24   : > { %1930 = sst [smem:[#allocation18_spill]] %s1747_s21  ;;  %p283_p13 = scmp.eq.s32.totalorder %s1699_s24, 1 }
  0x25   : > { %p289_p0 = scmp.eq.s32.totalorder %s1218_s1, 1  ;;  %p1295_p2 = scmp.lt.s32.totalorder %s1598_s20, 2 }
  0x26   : > { %s383_s26 = sand.u32 1, %s1594_s19   ;;  %p1762_p4 = por %p283_p13, %p43_p8 }
  0x27   : > { %p1766_p6 = por %p289_p0, %p49_p10  ;;  %s1225_s23 = sshll.u32 %s383_s26, 3 }
  0x28   : > { %s1226_s27 = sshll.u32 %s1598_s20, 3  ;;  %s387_s15 = scalar_lea.vmem [#allocation3], %s1225_s23 }
  0x29   : > { %s391_s12 = scalar_lea.hbm %s1906_s0, %s1226_s27  ;;  %s395_s16 = sshll.u32 %s387_s15, 4  ;;  %s396_s16 = int_to_ptr.vmem [resolvable:$true] %s395_s16 }
  0x2a   : > { %s393_s2 = sshll.u32 %s391_s12, 4  ;;  %p1776_p7 = pnand %p1295_p2, %p1749_p11  ;;  %s394_s2 = int_to_ptr.hbm [resolvable:$true] %s393_s2 }
  0x2b   : > { %s384_s5 = scalar_lea.sflag [#allocation4], %s383_s26  ;;  %s1494_s21 = sshra.s32 %s394_s2, 4  ;;  %s1495_s21 = int_to_ptr.hbm [resolvable:$true] %s1494_s21 }
  0x2c   : > { %s1496_s19 = scalar_lea.hbm %s1495_s21, 8  ;;  %p1498_p9 = pneg %p1776_p7 }
  0x2d   : > { %p1497_p8 = scmp.ne.s32.totalorder %s1495_s21, %s1496_s19  ;;  %s1501_s13 = scalar_lea.hbm %s1906_s0, 16 }
  0x2e   : > { %p1502_p11 = scmp.lt.s32.totalorder %s1495_s21, %s1906_s0  ;;  %p1503_p0 = scmp.lt.s32.totalorder %s1501_s13, %s1496_s19 }
  0x2f   : > { %p1499_p10 = pnand %p1498_p9, %p1497_p8 }
  0x30   : > { %p1504_p2 = por %p1503_p0, %p1502_p11 }
  0x31   : > { %p1500_p13 = pneg %p1499_p10 }
  0x33   : > { %p1505_p5 = pnand %p1504_p2, %p1500_p13 }
  0x35   : > { %1508 = shalt.err (!%p1505_p5)
}
  0x36   : > { %1286 = dma.hbm_to_vmem [thread:$0]  (!%p1776_p7), %s394_s2, 128, %s396_s16, %s384_s5  }
  0x37   : > { %404 = sbr.rel (%p1704_p3) target bundleno = 2225 (0x8b1), region = 64  ;;  %s1793_s26 = sand.u32 (!%p1704_p3), 1, %s1590_s18  }
  0x38   : > { %s1228_s12 = sshll.u32 (!%p1704_p3), %s1793_s26, 3  ;;  %s407_s15 = scalar_lea.sflag (!%p1704_p3), [#allocation4], %s1793_s26 }
  0x39   : > { %s410_s19 = scalar_lea.vmem (!%p1704_p3), [#allocation3], %s1228_s12 }
  0x3c   : > { %1569 = dma.done.wait (%p1755_p12), %s407_s15, 128  }
  0x3d   : > { %1571 = vsyncadd (%p1755_p12), %s407_s15, 4294967168 }
  0x3e   : > { %1573 = dma.done.wait (%p50_p1), [#allocation7], 8192  }
  0x3f   : > { %1575 = vsyncadd (%p50_p1), [#allocation7], 4294959104 }
  0x40   : > { %1577 = dma.done.wait (%p50_p1), [#allocation10], 4096  }
  0x41   : > { %1579 = vsyncadd (%p50_p1), [#allocation10], 4294963200  ;;  %v1811_v0 = vld [vmem:[%s410_s19] sm:$0xff]  ;;  %v548_v2 = vld [vmem:[#allocation6 + $0x168] sm:$0xff]  ;;  %vm613_vm3 = vcmask 64512   ;;  %s1608_s28 = smov 120  }
  0x42   : > { %473 = vadd.xlane.f32.xlu0 %v1811_v0  ;;  %v476_v1 = vmul.f32 %v1811_v0, %v1811_v0  ;;  %v549_v3 = vld [vmem:[#allocation6 + $0x170] sm:$0xff]  ;;  %v550_v4 = vld [vmem:[#allocation6 + $0x178] sm:$0xff]  ;;  %551 = vmatpush.msra.mxu0 %v548_v2  ;;  %v547_v7 = vld [vmem:[#allocation6 + $0x160] sm:$0xff]  ;;  %s1609_s16 = smov 112   ;;  %s1610_s1 = smov 104  }
  0x43   : > { %571 = vmatpush.msra.mxu1 %v549_v3  ;;  %591 = vmatpush.msra.mxu2 %v550_v4  ;;  %v545_v5 = vld [vmem:[#allocation6 + $0x150] sm:$0xff]  ;;  %v546_v6 = vld [vmem:[#allocation6 + $0x158] sm:$0xff]  ;;  %v543_v9 = vld [vmem:[#allocation6 + $0x140] sm:$0xff]  ;;  %s1611_s23 = smov 8   ;;  %s1612_s27 = smov 16  }
  0x44   : > { %552 = vmatpush.msra.mxu0 %v545_v5  ;;  %v542_v8 = vld [vmem:[#allocation6 + $0x138] sm:$0xff]  ;;  %v544_v10 = vld [vmem:[#allocation6 + $0x148] sm:$0xff]  ;;  %v539_v11 = vld [vmem:[#allocation6 + $0x120] sm:$0xff]  ;;  %s1614_s13 = smov 24   ;;  %s1247_s25 = sshll.u32 %s1699_s24, 3 }
  0x45   : > { %572 = vmatpush.msra.mxu1 %v546_v6  ;;  %592 = vmatpush.msra.mxu2 %v547_v7  ;;  %v540_v12 = vld [vmem:[#allocation6 + $0x128] sm:$0xff]  ;;  %v541_v13 = vld [vmem:[#allocation6 + $0x130] sm:$0xff]  ;;  %v538_v16 = vld [vmem:[#allocation6 + $0x118] sm:$0xff]  ;;  %s1095_s24 = scalar_lea.sflag [#allocation5], %s1793_s26 }
  0x46   : > { %553 = vmatpush.msra.mxu0 %v542_v8  ;;  %v536_v14 = vld [vmem:[#allocation6 + $0x108] sm:$0xff]  ;;  %v537_v15 = vld [vmem:[#allocation6 + $0x110] sm:$0xff]  ;;  %v534_v18 = vld [vmem:[#allocation6 + $0xf8] sm:$0xff] }
  0x47   : > { %573 = vmatpush.msra.mxu1 %v543_v9  ;;  %593 = vmatpush.msra.mxu2 %v544_v10  ;;  %v533_v17 = vld [vmem:[#allocation6 + $0xf0] sm:$0xff]  ;;  %v535_v19 = vld [vmem:[#allocation6 + $0x100] sm:$0xff]  ;;  %v530_v20 = vld [vmem:[#allocation6 + $0xd8] sm:$0xff] }
  0x48   : > { %554 = vmatpush.msra.mxu0 %v539_v11  ;;  %v531_v21 = vld [vmem:[#allocation6 + $0xe0] sm:$0xff]  ;;  %v532_v22 = vld [vmem:[#allocation6 + $0xe8] sm:$0xff]  ;;  %v529_v25 = vld [vmem:[#allocation6 + $0xd0] sm:$0xff] }
  0x49   : > { %574 = vmatpush.msra.mxu1 %v540_v12  ;;  %594 = vmatpush.msra.mxu2 %v541_v13  ;;  %v527_v23 = vld [vmem:[#allocation6 + $0xc0] sm:$0xff]  ;;  %v528_v24 = vld [vmem:[#allocation6 + $0xc8] sm:$0xff]  ;;  %v525_v27 = vld [vmem:[#allocation6 + $0xb0] sm:$0xff] }
  0x4a   : > { %477 = vadd.xlane.f32.xlu0 %v476_v1  ;;  %555 = vmatpush.msra.mxu0 %v536_v14  ;;  %v524_v26 = vld [vmem:[#allocation6 + $0xa8] sm:$0xff]  ;;  %v526_v28 = vld [vmem:[#allocation6 + $0xb8] sm:$0xff]  ;;  %v521_v29 = vld [vmem:[#allocation6 + $0x90] sm:$0xff] }
  0x4b   : > { %575 = vmatpush.msra.mxu1 %v537_v15  ;;  %595 = vmatpush.msra.mxu2 %v538_v16  ;;  %v522_v30 = vld [vmem:[#allocation6 + $0x98] sm:$0xff]  ;;  %v523_v31 = vld [vmem:[#allocation6 + $0xa0] sm:$0xff]  ;;  %v520_v34 = vld [vmem:[#allocation6 + $0x88] sm:$0xff] }
  0x4c   : > { %556 = vmatpush.msra.mxu0 %v533_v17  ;;  %v518_v32 = vld [vmem:[#allocation6 + $0x78] sm:$0xff]  ;;  %v519_v33 = vld [vmem:[#allocation6 + $0x80] sm:$0xff]  ;;  %v516_v36 = vld [vmem:[#allocation6 + $0x68] sm:$0xff] }
  0x4d   : > { %576 = vmatpush.msra.mxu1 %v534_v18  ;;  %596 = vmatpush.msra.mxu2 %v535_v19  ;;  %v515_v35 = vld [vmem:[#allocation6 + $0x60] sm:$0xff]  ;;  %v517_v37 = vld [vmem:[#allocation6 + $0x70] sm:$0xff]  ;;  %v512_v38 = vld [vmem:[#allocation6 + $0x48] sm:$0xff] }
  0x4e   : > { %557 = vmatpush.msra.mxu0 %v530_v20  ;;  %v513_v39 = vld [vmem:[#allocation6 + $0x50] sm:$0xff]  ;;  %v514_v40 = vld [vmem:[#allocation6 + $0x58] sm:$0xff]  ;;  %v511_v44 = vld [vmem:[#allocation6 + $0x40] sm:$0xff] }
  0x4f   : > { %577 = vmatpush.msra.mxu1 %v531_v21  ;;  %597 = vmatpush.msra.mxu2 %v532_v22  ;;  %v509_v41 = vld [vmem:[#allocation6 + $0x30] sm:$0xff]  ;;  %v510_v42 = vld [vmem:[#allocation6 + $0x38] sm:$0xff]  ;;  %v507_v46 = vld [vmem:[#allocation6 + $0x20] sm:$0xff] }
  0x50   : > { %558 = vmatpush.msra.mxu0 %v527_v23  ;;  %v506_v45 = vld [vmem:[#allocation6 + $0x18] sm:$0xff]  ;;  %v508_v47 = vld [vmem:[#allocation6 + $0x28] sm:$0xff]  ;;  %v503_v48 = vld [vmem:[#allocation6] sm:$0xff] }
  0x51   : > { %578 = vmatpush.msra.mxu1 %v528_v24  ;;  %598 = vmatpush.msra.mxu2 %v529_v25  ;;  %v504_v49 = vld [vmem:[#allocation6 + $0x8] sm:$0xff]  ;;  %v505_v50 = vld [vmem:[#allocation6 + $0x10] sm:$0xff] }
  0x52   : > { %559 = vmatpush.msra.mxu0 %v524_v26  ;;  %v1348_v1 = vld [vmem:[%s1913_s7] ss:$0 sm:$0xff] }
  0x53   : > { %579 = vmatpush.msra.mxu1 %v525_v27  ;;  %599 = vmatpush.msra.mxu2 %v526_v28  ;;  %v1349_v4 = vld [vmem:[%s1914_s8] ss:$0 sm:$0xff] }
  0x54   : > { %560 = vmatpush.msra.mxu0 %v521_v29 }
  0x55   : > { %580 = vmatpush.msra.mxu1 %v522_v30  ;;  %600 = vmatpush.msra.mxu2 %v523_v31 }
  0x56   : > { %561 = vmatpush.msra.mxu0 %v518_v32 }
  0x57   : > { %581 = vmatpush.msra.mxu1 %v519_v33  ;;  %601 = vmatpush.msra.mxu2 %v520_v34 }
  0x58   : > { %562 = vmatpush.msra.mxu0 %v515_v35 }
  0x59   : > { %582 = vmatpush.msra.mxu1 %v516_v36  ;;  %602 = vmatpush.msra.mxu2 %v517_v37 }
  0x5a   : > { %563 = vmatpush.msra.mxu0 %v512_v38 }
  0x5b   : > { %583 = vmatpush.msra.mxu1 %v513_v39  ;;  %603 = vmatpush.msra.mxu2 %v514_v40 }
  0x5c   : > { %564 = vmatpush.msra.mxu0 %v509_v41 }
  0x5d   : > { %584 = vmatpush.msra.mxu1 %v510_v42  ;;  %604 = vmatpush.msra.mxu2 %v511_v44 }
  0x5e   : > { %565 = vmatpush.msra.mxu0 %v506_v45 }
  0x5f   : > { %585 = vmatpush.msra.mxu1 %v507_v46  ;;  %605 = vmatpush.msra.mxu2 %v508_v47 }
  0x60   : > { %566 = vmatpush.msra.mxu0 %v503_v48 }
  0x61   : > { %586 = vmatpush.msra.mxu1 %v504_v49  ;;  %606 = vmatpush.msra.mxu2 %v505_v50 }
  0xb5   : > { %v474_v43 = vpop.xlane.xlu0 %473 }
  0xb6   : > { %v475_v51 = vmul.f32 0.03125, %v474_v43 }
  0xb8   : > { %v480_v53 = vmul.f32 %v475_v51, %v475_v51  ;;  %v482_v63 = vsub.f32 %v1811_v0, %v475_v51 }
  0xbd   : > { %v478_v52 = vpop.xlane.xlu0 %477 }
  0xbe   : > { %v479_v54 = vmul.f32 0.03125, %v478_v52 }
  0xc0   : > { %v481_v55 = vsub.f32 %v479_v54, %v480_v53 }
  0xc2   : > { %v483_v56 = vadd.f32 1e-05, %v481_v55 }
  0xc4   : > { %1354 = vrsqrt.f32 %v483_v56  ;;  %vm490_vm1 = vweird.f32 %v483_v56 }
  0xca   : > { %v1355_v57 = vpop.eup %1354 }
  0xcb   : > { %v485_v58 = vmul.f32 %v1355_v57, %v483_v56  ;;  %vm491_vm0 = vweird.f32 %v1355_v57 }
  0xcc   : > { %vm492_vm2 = vmor %vm490_vm1, %vm491_vm0 }
  0xcd   : > { %v486_v59 = vmul.f32 %v1355_v57, %v485_v58 }
  0xcf   : > { %v487_v60 = vmul.f32 0.5, %v486_v59 }
  0xd1   : > { %v488_v61 = vsub.f32 1.5, %v487_v60 }
  0xd3   : > { %v489_v62 = vmul.f32 %v1355_v57, %v488_v61 }
  0xd5   : > { %v493_v2 = vsel %vm492_vm2, %v1355_v57, %v489_v62 }
  0xd6   : > { %v494_v3 = vmul.f32 %v493_v2, %v482_v63 }
  0xd8   : > { %v498_v5 = vmul.f32 %v1348_v1, %v494_v3 }
  0xda   : > { %v502_v6 = vadd.f32 %v1349_v4, %v498_v5 }
  0xdc   : > { %567 = vmatmul.f32.vlgmr.msra.gmra.mxu0 %v502_v6  ;;  %587 = vmatmul.f32.vlgmr.msra.gmra.mxu1 %v502_v6 }
  0xdd   : > { %607 = vmatmul.f32.vlgmr.msra.gmra.mxu2 %v502_v6 }
 0x159   : > { %v568_v7 = vpop.f32.mrf.mxu0  ;;  %v588_v8 = vpop.f32.mrf.mxu1 }
 0x15a   : > { %v611_v9 = vmul.f32 0.35355338, %v568_v7  ;;  %1234 = vmatpush.xpose.msk.msrb.mxu2 %vm613_vm3, %v588_v8 }
 0x15c   : > { %688 = vrot.lane.b32.xlu2 %v611_v9, %s1608_s28 }
 0x15d   : > { %1235 = vmatmul.msk.f32.vlgmr.msrb.gmra.mxu2 %vm613_vm3, %v611_v9 }
 0x160   : > { %v608_v10 = vpop.f32.mrf.mxu2 }
 0x161   : > { %726 = vrot.lane.b32.xlu0 %v608_v10, %s1608_s28  ;;  %667 = vmatpush.msra.mxu3 %v608_v10 }
 0x169   : > { %773 = vrot.lane.b32.xlu0 %v611_v9, %s1609_s16 }
 0x171   : > { %810 = vrot.lane.b32.xlu0 %v608_v10, %s1609_s16 }
 0x179   : > { %857 = vrot.lane.b32.xlu0 %v611_v9, %s1610_s1 }
 0x1b6   : > { %v689_v21 = vpop.permute.xlu2 %688 }
 0x1d3   : > { %v727_v11 = vpop.permute.xlu0 %726 }
 0x1db   : > { %v774_v12 = vpop.permute.xlu0 %773 }
 0x1e0   : > { %v637_v13 = vpop.f32.mrf.mxu2 }
 0x1e1   : > { %v640_v14 = vsel %vm613_vm3, %v637_v13, -inf }
 0x1e2   : > { %641 = vmax.xlane.f32.xlu1 %v640_v14  ;;  %v957_v14 = vld [vmem:[#allocation8 + $0x78] sm:$0xff] }
 0x1e3   : > { %v811_v15 = vpop.permute.xlu0 %810 }
 0x1e4   : > { %831 = vmatpush.msra.mxu2 %v811_v15  ;;  %v956_v15 = vld [vmem:[#allocation8 + $0x70] sm:$0xff] }
 0x1eb   : > { %v858_v41 = vpop.permute.xlu0 %857 }
 0x1fb   : > { %690 = vrot.lane.b32.xlu1 %v588_v8, %s1608_s28 }
 0x203   : > { %775 = vrot.lane.b32.xlu1 %v588_v8, %s1609_s16 }
 0x255   : > { %v642_v16 = vpop.xlane.xlu1 %641 }
 0x256   : > { %v643_v17 = vsub.f32 %v637_v13, %v642_v16  ;;  %v955_v16 = vld [vmem:[#allocation8 + $0x68] sm:$0xff] }
 0x258   : > { %v644_v18 = vmul.f32 1.442695, %v643_v17  ;;  %v954_v17 = vld [vmem:[#allocation8 + $0x60] sm:$0xff] }
 0x25a   : > { %1356 = vpow2.f32 %v644_v18 }
 0x260   : > { %v1826_v19 = vpop.eup %1356 }
 0x261   : > { %1236 = vmatmul.msk.f32.vlgmr.msra.gmra.mxu3 %vm613_vm3, %v1826_v19  ;;  %v646_v1 = vsel %vm613_vm3, %v1826_v19, 0.0  ;;  %v953_v19 = vld [vmem:[#allocation8 + $0x58] sm:$0xff] }
 0x26d   : > { %v691_v20 = vpop.permute.xlu1 %690 }
 0x26e   : > { %1237 = vmatpush.xpose.msk.msrb.mxu3 %vm613_vm3, %v691_v20 }
 0x271   : > { %1238 = vmatmul.msk.f32.vlgmr.msrb.gmra.mxu3 %vm613_vm3, %v689_v21 }
 0x272   : > { %747 = vmatpush.msra.mxu3 %v727_v11 }
 0x275   : > { %v776_v22 = vpop.permute.xlu1 %775 }
 0x276   : > { %1240 = vmatpush.xpose.msk.msrb.mxu3 %vm613_vm3, %v776_v22  ;;  %v952_v22 = vld [vmem:[#allocation8 + $0x50] sm:$0xff] }
 0x2e4   : > { %v1833_v23 = vpop.f32.mrf.mxu3 }
 0x2f4   : > { %v713_v24 = vpop.f32.mrf.mxu3 }
 0x2f5   : > { %v716_v25 = vsel %vm613_vm3, %v713_v24, -inf }
 0x2f6   : > { %717 = vmax.xlane.f32.xlu2 %v716_v25 }
 0x30e   : > { %859 = vrot.lane.b32.xlu2 %v588_v8, %s1610_s1 }
 0x316   : > { %894 = vrot.lane.b32.xlu2 %v608_v10, %s1610_s1 }
 0x369   : > { %v718_v26 = vpop.xlane.xlu2 %717 }
 0x36a   : > { %v719_v27 = vsub.f32 %v713_v24, %v718_v26  ;;  %v951_v26 = vld [vmem:[#allocation8 + $0x48] sm:$0xff] }
 0x36c   : > { %v720_v28 = vmul.f32 1.442695, %v719_v27 }
 0x36e   : > { %1358 = vpow2.f32 %v720_v28 }
 0x371   : > { %v860_v29 = vpop.permute.xlu2 %859 }
 0x372   : > { %1243 = vmatpush.xpose.msk.msrb.mxu2 %vm613_vm3, %v860_v29  ;;  %v950_v29 = vld [vmem:[#allocation8 + $0x40] sm:$0xff] }
 0x374   : > { %v1359_v30 = vpop.eup %1358 }
 0x375   : > { %1239 = vmatmul.msk.f32.vlgmr.msra.gmra.mxu3 %vm613_vm3, %v1359_v30  ;;  %v722_v31 = vsel %vm613_vm3, %v1359_v30, 0.0 }
 0x376   : > { %723 = vadd.xlane.f32.xlu2 %v722_v31  ;;  %958 = vmatpush.msra.mxu3 %v957_v14 }
 0x378   : > { %959 = vmatpush.msra.mxu3 %v956_v15  ;;  %v1067_v15 = vld [vmem:[#allocation11 + $0x78] sm:$0xff] }
 0x379   : > { %v895_v39 = vpop.permute.xlu2 %894  ;;  %1072 = vmatpush.msrb.mxu1 %v1067_v15 }
 0x37a   : > { %960 = vmatpush.msra.mxu3 %v955_v16  ;;  %v1066_v16 = vld [vmem:[#allocation11 + $0x70] sm:$0xff] }
 0x37b   : > { %1073 = vmatpush.msrb.mxu1 %v1066_v16 }
 0x37c   : > { %961 = vmatpush.msra.mxu3 %v954_v17 }
 0x37d   : > { %1241 = vmatmul.msk.f32.vlgmr.msrb.gmra.mxu3 %vm613_vm3, %v774_v12  ;;  %v1613_v12 = vmov 0.0  }
 0x37e   : > { %612 = vst [vmem:[#allocation2] sm:$0xff] %v1613_v12  ;;  %962 = vmatpush.msra.mxu3 %v953_v19  ;;  %v1011_v12 = vld [vmem:[#allocation9] sm:$0xff] }
 0x380   : > { %963 = vmatpush.msra.mxu3 %v952_v22  ;;  %v1064_v22 = vld [vmem:[#allocation11 + $0x60] sm:$0xff] }
 0x382   : > { %964 = vmatpush.msra.mxu3 %v951_v26  ;;  %v1062_v26 = vld [vmem:[#allocation11 + $0x50] sm:$0xff] }
 0x384   : > { %965 = vmatpush.msra.mxu3 %v950_v29 }
 0x3e9   : > { %v724_v42 = vpop.xlane.xlu2 %723 }
 0x3ea   : > { %v763_v51 = vand.u32 2147483648, %v724_v42  ;;  %vm757_vm5 = vweird.f32 %v724_v42  ;;  %v761_v52 = vand.u32 2147483647, %v724_v42 }
 0x3ec   : > { %v764_v54 = vor.u32 1.1754944e-38, %v763_v51  ;;  %vm762_vm7 = vcmp.eq.f32.partialorder %v761_v52, 8.507059e+37 }
 0x3f8   : > { %v749_v32 = vpop.f32.mrf.mxu3 }
 0x400   : > { %v798_v33 = vpop.f32.mrf.mxu3 }
 0x401   : > { %v801_v34 = vsel %vm613_vm3, %v798_v33, -inf }
 0x402   : > { %802 = vmax.xlane.f32.xlu1 %v801_v34 }
 0x475   : > { %v803_v35 = vpop.xlane.xlu1 %802 }
 0x476   : > { %v804_v36 = vsub.f32 %v798_v33, %v803_v35  ;;  %v949_v33 = vld [vmem:[#allocation8 + $0x38] sm:$0xff] }
 0x477   : > { %966 = vmatpush.msra.mxu3 %v949_v33 }
 0x478   : > { %v805_v37 = vmul.f32 1.442695, %v804_v36 }
 0x47a   : > { %1360 = vpow2.f32 %v805_v37 }
 0x47b   : > { %1362 = vrcp.f32 %v724_v42 }
 0x480   : > { %v1361_v38 = vpop.eup %1360 }
 0x481   : > { %1242 = vmatmul.msk.f32.vlgmr.msra.gmra.mxu2 %vm613_vm3, %v1361_v38  ;;  %v807_v40 = vsel %vm613_vm3, %v1361_v38, 0.0  ;;  %v1363_v44 = vpop.eup %1362  ;;  %v948_v38 = vld [vmem:[#allocation8 + $0x30] sm:$0xff] }
 0x482   : > { %915 = vmatpush.msra.mxu2 %v895_v39  ;;  %808 = vadd.xlane.f32.xlu1 %v807_v40  ;;  %v753_v45 = vmul.f32 %v1363_v44, %v724_v42  ;;  %vm758_vm4 = vweird.f32 %v1363_v44  ;;  %v947_v42 = vld [vmem:[#allocation8 + $0x28] sm:$0xff] }
 0x483   : > { %vm759_vm6 = vmor %vm757_vm5, %vm758_vm4  ;;  %967 = vmatpush.msra.mxu3 %v948_v38  ;;  %vm771_vm5 = vcmask 130112   ;;  %v1055_v38 = vld [vmem:[#allocation11 + $0x18] sm:$0xff] }
 0x484   : > { %v754_v48 = vsub.f32 1.0, %v753_v45  ;;  %v946_v45 = vld [vmem:[#allocation8 + $0x20] sm:$0xff] }
 0x485   : > { %968 = vmatpush.msra.mxu3 %v947_v42 }
 0x486   : > { %v755_v49 = vmul.f32 %v1363_v44, %v754_v48 }
 0x487   : > { %969 = vmatpush.msra.mxu3 %v946_v45 }
 0x488   : > { %v756_v50 = vadd.f32 %v1363_v44, %v755_v49 }
 0x489   : > { %1244 = vmatmul.msk.f32.vlgmr.msrb.gmra.mxu2 %vm613_vm3, %v858_v41 }
 0x48a   : > { %v760_v53 = vsel %vm759_vm6, %v1363_v44, %v756_v50  ;;  %vm855_vm6 = vcmask 195712  }
 0x48b   : > { %v765_v55 = vsel %vm762_vm7, %v764_v54, %v760_v53  ;;  %v945_v53 = vld [vmem:[#allocation8 + $0x18] sm:$0xff]  ;;  %v944_v54 = vld [vmem:[#allocation8 + $0x10] sm:$0xff]  ;;  %vm939_vm7 = vcmask 261312  }
 0x48c   : > { %v766_v56 = vmul.f32 %v765_v55, %v749_v32  ;;  %970 = vmatpush.msra.mxu3 %v945_v53  ;;  %v943_v55 = vld [vmem:[#allocation8 + $0x8] sm:$0xff] }
 0x48e   : > { %971 = vmatpush.msra.mxu3 %v944_v54  ;;  %v1353_v54 = vld [vmem:[%s1912_s6] ss:$0 sm:$0xff] }
 0x490   : > { %972 = vmatpush.msra.mxu3 %v943_v55 }
 0x4f5   : > { %v809_v60 = vpop.xlane.xlu1 %808 }
 0x4f6   : > { %v847_v6 = vand.u32 2147483648, %v809_v60  ;;  %vm841_vm9 = vweird.f32 %v809_v60  ;;  %v845_v7 = vand.u32 2147483647, %v809_v60 }
 0x4f8   : > { %v848_v9 = vor.u32 1.1754944e-38, %v847_v6  ;;  %vm846_vm11 = vcmp.eq.f32.partialorder %v845_v7, 8.507059e+37  ;;  %v1017_v6 = vld [vmem:[#allocation9 + $0x30] sm:$0xff]  ;;  %v1016_v7 = vld [vmem:[#allocation9 + $0x28] sm:$0xff] }
 0x504   : > { %v833_v43 = vpop.f32.mrf.mxu2 }
 0x50c   : > { %v882_v46 = vpop.f32.mrf.mxu2 }
 0x50d   : > { %v885_v47 = vsel %vm613_vm3, %v882_v46, -inf }
 0x50e   : > { %886 = vmax.xlane.f32.xlu0 %v885_v47 }
 0x522   : > { %768 = vrot.lane.b32.xlu0 %v766_v56, %s1611_s23  ;;  %v942_v56 = vld [vmem:[#allocation8] sm:$0xff]  ;;  %s1105_s23 = scalar_lea.hbm %s1917_s11, %s1247_s25 }
 0x523   : > { %973 = vmatpush.msra.mxu3 %v942_v56  ;;  %s1109_s14 = sshll.u32 %s1105_s23, 4  ;;  %s1110_s14 = int_to_ptr.hbm [resolvable:$true] %s1109_s14 }
 0x524   : > { %s1538_s22 = sshra.s32 %s1110_s14, 4  ;;  %s1539_s22 = int_to_ptr.hbm [resolvable:$true] %s1538_s22 }
 0x525   : > { %s1540_s15 = scalar_lea.hbm %s1539_s22, 8  ;;  %p1545_p12 = scmp.lt.s32.totalorder %s1539_s22, %s1917_s11 }
 0x526   : > { %p1541_p1 = scmp.ne.s32.totalorder %s1539_s22, %s1540_s15 }
 0x528   : > { %p1542_p3 = pnand %p1541_p1, %p1762_p4 }
 0x52a   : > { %p1543_p5 = pneg %p1542_p3 }
 0x581   : > { %v887_v57 = vpop.xlane.xlu0 %886 }
 0x582   : > { %v888_v58 = vsub.f32 %v882_v46, %v887_v57 }
 0x584   : > { %v889_v59 = vmul.f32 1.442695, %v888_v58 }
 0x586   : > { %1364 = vpow2.f32 %v889_v59 }
 0x587   : > { %1366 = vrcp.f32 %v809_v60 }
 0x58c   : > { %v1365_v61 = vpop.eup %1364 }
 0x58d   : > { %1245 = vmatmul.msk.f32.vlgmr.msra.gmra.mxu2 %vm613_vm3, %v1365_v61  ;;  %v891_v62 = vsel %vm613_vm3, %v1365_v61, 0.0  ;;  %v1367_v63 = vpop.eup %1366  ;;  %v1026_v61 = vld [vmem:[#allocation9 + $0x78] sm:$0xff] }
 0x58e   : > { %892 = vadd.xlane.f32.xlu1 %v891_v62  ;;  %v837_v2 = vmul.f32 %v1367_v63, %v809_v60  ;;  %vm842_vm8 = vweird.f32 %v1367_v63  ;;  %1031 = vmatpush.msrb.mxu0 %v1026_v61  ;;  %v1025_v62 = vld [vmem:[#allocation9 + $0x70] sm:$0xff] }
 0x58f   : > { %vm843_vm10 = vmor %vm841_vm9, %vm842_vm8 }
 0x590   : > { %v838_v3 = vsub.f32 1.0, %v837_v2  ;;  %1032 = vmatpush.msrb.mxu0 %v1025_v62  ;;  %v1022_v2 = vld [vmem:[#allocation9 + $0x58] sm:$0xff] }
 0x592   : > { %v839_v4 = vmul.f32 %v1367_v63, %v838_v3  ;;  %v1021_v3 = vld [vmem:[#allocation9 + $0x50] sm:$0xff] }
 0x594   : > { %v840_v5 = vadd.f32 %v1367_v63, %v839_v4  ;;  %v769_v51 = vpop.permute.xlu0 %768  ;;  %v1019_v4 = vld [vmem:[#allocation9 + $0x40] sm:$0xff] }
 0x596   : > { %647 = vadd.xlane.f32.xlu1 %v646_v1  ;;  %v844_v8 = vsel %vm843_vm10, %v1367_v63, %v840_v5  ;;  %v1024_v63 = vld [vmem:[#allocation9 + $0x68] sm:$0xff]  ;;  %v1023_v1 = vld [vmem:[#allocation9 + $0x60] sm:$0xff]  ;;  %v1018_v5 = vld [vmem:[#allocation9 + $0x38] sm:$0xff] }
 0x597   : > { %v849_v10 = vsel %vm846_vm11, %v848_v9, %v844_v8  ;;  %1033 = vmatpush.msrb.mxu0 %v1024_v63  ;;  %v1015_v8 = vld [vmem:[#allocation9 + $0x20] sm:$0xff]  ;;  %v1014_v9 = vld [vmem:[#allocation9 + $0x18] sm:$0xff] }
 0x598   : > { %v850_v11 = vmul.f32 %v849_v10, %v833_v43  ;;  %v1013_v10 = vld [vmem:[#allocation9 + $0x10] sm:$0xff] }
 0x599   : > { %1034 = vmatpush.msrb.mxu0 %v1023_v1 }
 0x59b   : > { %1035 = vmatpush.msrb.mxu0 %v1022_v2 }
 0x59d   : > { %1036 = vmatpush.msrb.mxu0 %v1021_v3 }
 0x5af   : > { %852 = vrot.lane.b32.xlu1 %v850_v11, %s1612_s27  ;;  %v1012_v11 = vld [vmem:[#allocation9 + $0x8] sm:$0xff]  ;;  %s469_s27 = scalar_lea.vmem [#allocation12], %s1228_s12  ;;  %s1544_s12 = scalar_lea.hbm %s1917_s11, 16 }
 0x5b0   : > { %p1546_p7 = scmp.lt.s32.totalorder %s1544_s12, %s1540_s15 }
 0x5b2   : > { %p1547_p8 = por %p1546_p7, %p1545_p12 }
 0x5b4   : > { %p1548_p9 = pnand %p1547_p8, %p1543_p5 }
 0x601   : > { %v893_v13 = vpop.xlane.xlu1 %892 }
 0x602   : > { %1368 = vrcp.f32 %v893_v13  ;;  %v931_v25 = vand.u32 2147483648, %v893_v13  ;;  %v929_v28 = vand.u32 2147483647, %v893_v13  ;;  %vm925_vm13 = vweird.f32 %v893_v13 }
 0x604   : > { %v932_v32 = vor.u32 1.1754944e-38, %v931_v25  ;;  %vm930_vm15 = vcmp.eq.f32.partialorder %v929_v28, 8.507059e+37  ;;  %v1063_v25 = vld [vmem:[#allocation11 + $0x58] sm:$0xff]  ;;  %v1060_v28 = vld [vmem:[#allocation11 + $0x40] sm:$0xff] }
 0x608   : > { %v1369_v18 = vpop.eup %1368 }
 0x609   : > { %v921_v20 = vmul.f32 %v1369_v18, %v893_v13  ;;  %v648_v21 = vpop.xlane.xlu1 %647  ;;  %vm926_vm12 = vweird.f32 %v1369_v18 }
 0x60a   : > { %1370 = vrcp.f32 %v648_v21  ;;  %vm927_vm14 = vmor %vm925_vm13, %vm926_vm12  ;;  %v683_v41 = vand.u32 2147483648, %v648_v21  ;;  %v681_v44 = vand.u32 2147483647, %v648_v21  ;;  %vm677_vm1 = vweird.f32 %v648_v21 }
 0x60b   : > { %v922_v24 = vsub.f32 1.0, %v921_v20  ;;  %v1065_v20 = vld [vmem:[#allocation11 + $0x68] sm:$0xff] }
 0x60c   : > { %v684_v47 = vor.u32 1.1754944e-38, %v683_v41  ;;  %vm682_vm4 = vcmp.eq.f32.partialorder %v681_v44, 8.507059e+37  ;;  %1074 = vmatpush.msrb.mxu1 %v1065_v20  ;;  %v1350_v41 = vld [vmem:[%s1915_s9] ss:$0 sm:$0xff] }
 0x60d   : > { %v923_v27 = vmul.f32 %v1369_v18, %v922_v24  ;;  %v1351_v44 = vld [vmem:[%s1916_s10] ss:$0 sm:$0xff] }
 0x60e   : > { %1075 = vmatpush.msrb.mxu1 %v1064_v22 }
 0x60f   : > { %v924_v30 = vadd.f32 %v1369_v18, %v923_v27  ;;  %v1061_v27 = vld [vmem:[#allocation11 + $0x48] sm:$0xff] }
 0x610   : > { %v1371_v31 = vpop.eup %1370  ;;  %v917_v36 = vpop.f32.mrf.mxu2  ;;  %1076 = vmatpush.msrb.mxu1 %v1063_v25 }
 0x611   : > { %v673_v34 = vmul.f32 %v1371_v31, %v648_v21  ;;  %v928_v35 = vsel %vm927_vm14, %v1369_v18, %v924_v30  ;;  %vm678_vm0 = vweird.f32 %v1371_v31  ;;  %v1059_v30 = vld [vmem:[#allocation11 + $0x38] sm:$0xff] }
 0x612   : > { %v933_v37 = vsel %vm930_vm15, %v932_v32, %v928_v35  ;;  %vm679_vm2 = vmor %vm677_vm1, %vm678_vm0  ;;  %1077 = vmatpush.msrb.mxu1 %v1062_v26  ;;  %v1058_v32 = vld [vmem:[#allocation11 + $0x30] sm:$0xff] }
 0x613   : > { %v674_v39 = vsub.f32 1.0, %v673_v34  ;;  %v934_v40 = vmul.f32 %v933_v37, %v917_v36  ;;  %v1057_v34 = vld [vmem:[#allocation11 + $0x28] sm:$0xff]  ;;  %v1056_v36 = vld [vmem:[#allocation11 + $0x20] sm:$0xff] }
 0x614   : > { %1078 = vmatpush.msrb.mxu1 %v1061_v27 }
 0x615   : > { %v675_v43 = vmul.f32 %v1371_v31, %v674_v39  ;;  %936 = vrot.lane.b32.xlu0 %v934_v40, %s1614_s13  ;;  %s1107_s13 = sshll.u32 %s469_s27, 4  ;;  %s1108_s13 = int_to_ptr.vmem [resolvable:$true] %s1107_s13 }
 0x616   : > { %1079 = vmatpush.msrb.mxu1 %v1060_v28 }
 0x617   : > { %v676_v46 = vadd.f32 %v1371_v31, %v675_v43 }
 0x618   : > { %1080 = vmatpush.msrb.mxu1 %v1059_v30 }
 0x619   : > { %v680_v48 = vsel %vm679_vm2, %v1371_v31, %v676_v46 }
 0x61a   : > { %v685_v49 = vsel %vm682_vm4, %v684_v47, %v680_v48  ;;  %1081 = vmatpush.msrb.mxu1 %v1058_v32  ;;  %v1054_v47 = vld [vmem:[#allocation11 + $0x10] sm:$0xff]  ;;  %v1053_v48 = vld [vmem:[#allocation11 + $0x8] sm:$0xff] }
 0x61b   : > { %v686_v50 = vmul.f32 %v685_v49, %v1833_v23  ;;  %v1052_v49 = vld [vmem:[#allocation11] sm:$0xff] }
 0x61c   : > { %1082 = vmatpush.msrb.mxu1 %v1057_v34 }
 0x61d   : > { %687 = vst.msk [vmem:[#allocation2] sm:$0xff] %vm613_vm3, %v686_v50  ;;  %v1352_v50 = vld [vmem:[%s1910_s4] ss:$0 sm:$0xff] }
 0x61e   : > { %772 = vst.msk [vmem:[#allocation2] sm:$0xff] %vm771_vm5, %v769_v51  ;;  %1083 = vmatpush.msrb.mxu1 %v1056_v36 }
 0x620   : > { %1084 = vmatpush.msrb.mxu1 %v1055_v38 }
 0x621   : > { %v853_v52 = vpop.permute.xlu1 %852 }
 0x622   : > { %856 = vst.msk [vmem:[#allocation2] sm:$0xff] %vm855_vm6, %v853_v52  ;;  %1085 = vmatpush.msrb.mxu1 %v1054_v47 }
 0x624   : > { %1086 = vmatpush.msrb.mxu1 %v1053_v48 }
 0x626   : > { %1087 = vmatpush.msrb.mxu1 %v1052_v49 }
 0x687   : > { %v937_v57 = vpop.permute.xlu0 %936 }
 0x688   : > { %940 = vst.msk [vmem:[#allocation2] sm:$0xff] %vm939_vm7, %v937_v57 }
 0x68f   : > { %v941_v23 = vld [vmem:[#allocation2] sm:$0xff] }
 0x690   : > { %974 = vmatmul.f32.vlgmr.msra.gmra.mxu3 %v941_v23 }
 0x713   : > { %v975_v58 = vpop.f32.mrf.mxu3 }
 0x714   : > { %v1852_v59 = vadd.f32 %v975_v58, %v1811_v0  ;;  %v1020_v0 = vld [vmem:[#allocation9 + $0x48] sm:$0xff] }
 0x715   : > { %1037 = vmatpush.msrb.mxu0 %v1020_v0 }
 0x716   : > { %981 = vadd.xlane.f32.xlu2 %v1852_v59  ;;  %v984_v60 = vmul.f32 %v1852_v59, %v1852_v59 }
 0x717   : > { %1038 = vmatpush.msrb.mxu0 %v1019_v4 }
 0x718   : > { %985 = vadd.xlane.f32.xlu0 %v984_v60 }
 0x719   : > { %1039 = vmatpush.msrb.mxu0 %v1018_v5 }
 0x71b   : > { %1040 = vmatpush.msrb.mxu0 %v1017_v6 }
 0x71d   : > { %1041 = vmatpush.msrb.mxu0 %v1016_v7 }
 0x71f   : > { %1042 = vmatpush.msrb.mxu0 %v1015_v8 }
 0x721   : > { %1043 = vmatpush.msrb.mxu0 %v1014_v9 }
 0x723   : > { %1044 = vmatpush.msrb.mxu0 %v1013_v10 }
 0x725   : > { %1045 = vmatpush.msrb.mxu0 %v1012_v11 }
 0x727   : > { %1046 = vmatpush.msrb.mxu0 %v1011_v12 }
 0x789   : > { %v982_v13 = vpop.xlane.xlu2 %981 }
 0x78a   : > { %v983_v14 = vmul.f32 0.03125, %v982_v13 }
 0x78b   : > { %v986_v17 = vpop.xlane.xlu0 %985 }
 0x78c   : > { %v988_v18 = vmul.f32 %v983_v14, %v983_v14  ;;  %v987_v19 = vmul.f32 0.03125, %v986_v17  ;;  %v990_v40 = vsub.f32 %v1852_v59, %v983_v14 }
 0x78e   : > { %v989_v21 = vsub.f32 %v987_v19, %v988_v18 }
 0x790   : > { %v991_v24 = vadd.f32 1e-05, %v989_v21 }
 0x792   : > { %1372 = vrsqrt.f32 %v991_v24  ;;  %vm998_vm8 = vweird.f32 %v991_v24 }
 0x798   : > { %v1373_v29 = vpop.eup %1372 }
 0x799   : > { %v993_v31 = vmul.f32 %v1373_v29, %v991_v24  ;;  %vm999_vm3 = vweird.f32 %v1373_v29 }
 0x79a   : > { %vm1000_vm9 = vmor %vm998_vm8, %vm999_vm3 }
 0x79b   : > { %v994_v33 = vmul.f32 %v1373_v29, %v993_v31 }
 0x79d   : > { %v995_v35 = vmul.f32 0.5, %v994_v33 }
 0x79f   : > { %v996_v37 = vsub.f32 1.5, %v995_v35 }
 0x7a1   : > { %v997_v39 = vmul.f32 %v1373_v29, %v996_v37 }
 0x7a3   : > { %v1001_v42 = vsel %vm1000_vm9, %v1373_v29, %v997_v39 }
 0x7a4   : > { %v1002_v43 = vmul.f32 %v1001_v42, %v990_v40 }
 0x7a6   : > { %v1006_v45 = vmul.f32 %v1350_v41, %v1002_v43 }
 0x7a8   : > { %v1010_v46 = vadd.f32 %v1351_v44, %v1006_v45 }
 0x7aa   : > { %1047 = vmatmul.f32.vlgmr.msrb.gmra.mxu0 %v1010_v46 }
 0x827   : > { %v1048_v51 = vpop.f32.mrf.mxu0 }
 0x828   : > { %v1049_v52 = vadd.f32 %v1352_v50, %v1048_v51 }
 0x82a   : > { %v1051_v53 = vmax.f32 %v1049_v52, 0.0 }
 0x82c   : > { %1088 = vmatmul.f32.vlgmr.msrb.gmra.mxu1 %v1051_v53 }
 0x8a9   : > { %v1089_v55 = vpop.f32.mrf.mxu1 }
 0x8aa   : > { %v1090_v56 = vadd.f32 %v1353_v54, %v1089_v55 }
 0x8ac   : > { %v1092_v57 = vadd.f32 %v1090_v56, %v1852_v59 }
 0x8ae   : > { %1093 = vst [vmem:[%s469_s27] sm:$0xff] %v1092_v57 }
 0x8af   : > { %1551 = shalt.err (!%p1548_p9)
}
 0x8b0   : > { %1268 = dma.vmem_to_hbm [thread:$0]  (%p1762_p4), %s1108_s13, 128, %s1110_s14, %s1095_s24  }
 0x8b1 PF: > { %s1121_s26 = sand.u32 1, %s1586_s17   ;;  %p1936_p10 = scmp.ge.s32.totalorder %s1598_s20, 2 }
 0x8b2   : > { %s1122_s21 = scalar_lea.sflag [#allocation5], %s1121_s26 }
 0x8b3   : > { %p1288_p13 = pnand %p1936_p10, %p1766_p6 }
 0x8b5   : > { %p1289_p11 = pneg %p1288_p13 }
 0x8b7   : > { %1581 = dma.done.wait (%p1289_p11), %s1122_s21, 128  }
 0x8b8   : > { %1583 = vsyncadd (%p1289_p11), %s1122_s21, 4294967168  ;;  %s1937_s28 = sld [smem:[#allocation17_spill]]  ;;  %p26_p0 = scmp.ge.s32.totalorder %s1736_s3, 4  }
 0x8b9   : > { %s1938_s19 = sld [smem:[#allocation18_spill]]  ;;  %s1939_s17 = smov %s1590_s18 }
 0x8ba   : > { %s1941_s20 = smov %s1736_s3  ;;  %28 = sbr.rel (!%p26_p0) target bundleno = 12 (0xc), region = 125 }
 0x8be   : > { %s1940_s18 = smov %s1937_s28 }
 0x8bf   :  { %1128 = vsyncpa [#allocation4], 1 }
 0x8c0   :  { %1130 = vsyncpa [#allocation4 + $0x1], 1 }
 0x8c1   :  { %1131 = vsyncpa [#allocation7], 1 }
 0x8c2   :  { %1132 = vsyncpa [#allocation10], 1 }
 0x8c3   :  { %1133 = vsyncpa [#allocation5], 1 }
 0x8c4   :  { %1135 = vsyncpa [#allocation5 + $0x1], 1 }

// kernel: tpu_custom_call.1
= control target key start
LH: loop header
LB: loop body
LE: loop exit
PB: predicated region body
PF: predicated region fallthrough
CT: control target
= control target key end

     0   :  { %s1906_s0 = inlined_call_operand.hbm [shape: f32[16,128], index: 0, kind: input, shape index: {}]   ;;  %s1907_s1 = inlined_call_operand.hbm [shape: f32[128,384], index: 1, kind: input, shape index: {}]   ;;  %s1908_s2 = inlined_call_operand.hbm [shape: f32[128,128], index: 2, kind: input, shape index: {}]   ;;  %s1909_s3 = inlined_call_operand.hbm [shape: f32[128,128], index: 3, kind: input, shape index: {}]   ;;  %s1910_s4 = inlined_call_operand.vmem [shape: f32[1,128], index: 4, kind: input, shape index: {}]   ;;  %s1911_s5 = inlined_call_operand.hbm [shape: f32[128,128], index: 5, kind: input, shape index: {}]   ;;  %s1912_s6 = inlined_call_operand.vmem [shape: f32[1,128], index: 6, kind: input, shape index: {}]   ;;  %s1913_s7 = inlined_call_operand.vmem [shape: f32[1,128], index: 7, kind: input, shape index: {}]   ;;  %s1914_s8 = inlined_call_operand.vmem [shape: f32[1,128], index: 8, kind: input, shape index: {}]   ;;  %s1915_s9 = inlined_call_operand.vmem [shape: f32[1,128], index: 9, kind: input, shape index: {}]   ;;  %s1916_s10 = inlined_call_operand.vmem [shape: f32[1,128], index: 10, kind: input, shape index: {}]   ;;  %s1917_s11 = inlined_call_operand.hbm [shape: f32[16,128], index: 11, kind: output, shape index: {}]  }
   0x1   :  { %1919 = sst [smem:[#allocation19_spill]] %s1907_s1 }
   0x2   :  { %1920 = sst [smem:[#allocation20_spill]] %s1908_s2 }
   0x3   :  { %1921 = sst [smem:[#allocation21_spill]] %s1909_s3 }
   0x4   :  { %1922 = sst [smem:[#allocation22_spill]] %s1911_s5 }
   0x5   :  { %16 = vsyncpa [#allocation4], 0 }
   0x6   :  { %18 = vsyncpa [#allocation4 + $0x1], 0 }
   0x7   :  { %19 = vsyncpa [#allocation7], 0 }
   0x8   :  { %20 = vsyncpa [#allocation10], 0 }
   0x9   :  { %21 = vsyncpa [#allocation5], 0 }
   0xa   :  { %23 = vsyncpa [#allocation5 + $0x1], 0  ;;  %s1675_s17 = smov 0   ;;  %s1677_s18 = smov 0  }
   0xb   :  { %s1679_s19 = smov 0   ;;  %s1681_s20 = smov 0  }
   0xc LB: > { %1923 = sst [smem:[#allocation17_spill]] %s1594_s19  ;;  %s1699_s24 = sadd.s32 4294967295, %s1598_s20   ;;  %s1598_s20 = sphi %s1681_s20, %s1941_s20   ;;  %s1594_s19 = sphi %s1679_s19, %s1938_s19   ;;  %s1590_s18 = sphi %s1677_s18, %s1940_s18   ;;  %s1586_s17 = sphi %s1675_s17, %s1939_s17  }
   0xd   : > { %s1924_s1 = sld [smem:[#allocation19_spill]]  ;;  %p1219_p0 = scmp.ge.s32.totalorder %s1598_s20, 1 }
   0xe   : > { %p50_p1 = scmp.eq.s32.totalorder %s1699_s24, 0  ;;  %p296_p2 = scmp.lt.s32.totalorder %s1598_s20, 3 }
   0xf   : > { %s1600_s26 = smov [#allocation6]   ;;  %s1927_s3 = sld [smem:[#allocation21_spill]] }
  0x10   : > { %p1704_p3 = pnand %p1219_p0, %p296_p2  ;;  %s309_s27 = sshll.u32 %s1600_s26, 4  ;;  %s310_s27 = int_to_ptr.vmem [resolvable:$true] %s309_s27 }
  0x11   : > { %s1601_s13 = smov 384   ;;  %s1602_s14 = smov 24  }
  0x12   : > { %p1270_p4 = pneg %p1704_p3  ;;  %s1603_s15 = smov [#allocation9]  }
  0x13   : > { %s307_s23 = sshll.u32 %s1924_s1, 4  ;;  %s337_s16 = sshll.u32 %s1603_s15, 4  ;;  %s308_s23 = int_to_ptr.hbm [resolvable:$true] %s307_s23  ;;  %s338_s16 = int_to_ptr.vmem [resolvable:$true] %s337_s16 }
  0x14   : > { %p1713_p6 = pnand %p1270_p4, %p50_p1  ;;  %s1928_s2 = sld [smem:[#allocation20_spill]] }
  0x15   : > { %s335_s12 = sshll.u32 %s1927_s3, 4  ;;  %s1604_s29 = smov 128   ;;  %s336_s12 = int_to_ptr.hbm [resolvable:$true] %s335_s12 }
  0x16   : > { %1273 = dma.hbm_to_vmem [thread:$0]  (!%p1713_p6), %s308_s23, 6144, %s310_s27, [#allocation7], %s1601_s13, %s1601_s13, %s1602_s14  }
  0x17   : > { %s1605_s30 = smov 8   ;;  %s1929_s5 = sld [smem:[#allocation22_spill]] }
  0x18   : > { %1279 = dma.hbm_to_vmem [thread:$0]  (!%p1713_p6), %s336_s12, 2048, %s338_s16, [#allocation10], %s1604_s29, %s1604_s29, %s1605_s30  }
  0x19   : > { %s1606_s27 = smov [#allocation8]   ;;  %s1607_s14 = smov [#allocation11]  }
  0x1a   : > { %s321_s26 = sshll.u32 %s1928_s2, 4  ;;  %s323_s13 = sshll.u32 %s1606_s27, 4  ;;  %s322_s26 = int_to_ptr.hbm [resolvable:$true] %s321_s26  ;;  %s324_s13 = int_to_ptr.vmem [resolvable:$true] %s323_s13 }
  0x1b   : > { %1276 = dma.hbm_to_vmem [thread:$0]  (!%p1713_p6), %s322_s26, 2048, %s324_s13, [#allocation7], %s1604_s29, %s1604_s29, %s1605_s30  }
  0x1c   : > { %s354_s12 = sshll.u32 %s1607_s14, 4  ;;  %s1218_s1 = sadd.s32 4294967294, %s1598_s20   ;;  %s355_s12 = int_to_ptr.vmem [resolvable:$true] %s354_s12 }
  0x1d   : > { %s352_s23 = sshll.u32 %s1929_s5, 4  ;;  %s1736_s3 = sadd.s32 1, %s1598_s20   ;;  %s353_s23 = int_to_ptr.hbm [resolvable:$true] %s352_s23 }
  0x1e   : > { %1282 = dma.hbm_to_vmem [thread:$0]  (!%p1713_p6), %s353_s23, 2048, %s355_s12, [#allocation10], %s1604_s29, %s1604_s29, %s1605_s30  }
  0x1f   : > { %s33_s15 = ssub.s32 %s1598_s20, %s1736_s3  ;;  %s36_s16 = sadd.s32 1, %s1594_s19 }
  0x20   : > { %p34_p7 = scmp.eq.s32.totalorder %s33_s15, 0  ;;  %p43_p8 = scmp.ne.s32.totalorder %s1594_s19, %s1590_s18 }
  0x21   : > { %p44_p9 = scmp.eq.s32.totalorder %s1598_s20, 0  ;;  %p49_p10 = scmp.ne.s32.totalorder %s1590_s18, %s1586_s17 }
  0x22   : > { %s1747_s21 = scalar_select %p34_p7, %s1594_s19, %s36_s16  }
  0x23   : > { %p1749_p11 = por %p44_p9, %p43_p8  ;;  %p1755_p12 = por %p50_p1, %p49_p10 }
  0x24   : > { %1930 = sst [smem:[#allocation18_spill]] %s1747_s21  ;;  %p283_p13 = scmp.eq.s32.totalorder %s1699_s24, 1 }
  0x25   : > { %p289_p0 = scmp.eq.s32.totalorder %s1218_s1, 1  ;;  %p1295_p2 = scmp.lt.s32.totalorder %s1598_s20, 2 }
  0x26   : > { %s383_s26 = sand.u32 1, %s1594_s19   ;;  %p1762_p4 = por %p283_p13, %p43_p8 }
  0x27   : > { %p1766_p6 = por %p289_p0, %p49_p10  ;;  %s1225_s23 = sshll.u32 %s383_s26, 3 }
  0x28   : > { %s1226_s27 = sshll.u32 %s1598_s20, 3  ;;  %s387_s15 = scalar_lea.vmem [#allocation3], %s1225_s23 }
  0x29   : > { %s391_s12 = scalar_lea.hbm %s1906_s0, %s1226_s27  ;;  %s395_s16 = sshll.u32 %s387_s15, 4  ;;  %s396_s16 = int_to_ptr.vmem [resolvable:$true] %s395_s16 }
  0x2a   : > { %s393_s2 = sshll.u32 %s391_s12, 4  ;;  %p1776_p7 = pnand %p1295_p2, %p1749_p11  ;;  %s394_s2 = int_to_ptr.hbm [resolvable:$true] %s393_s2 }
  0x2b   : > { %s384_s5 = scalar_lea.sflag [#allocation4], %s383_s26  ;;  %s1494_s21 = sshra.s32 %s394_s2, 4  ;;  %s1495_s21 = int_to_ptr.hbm [resolvable:$true] %s1494_s21 }
  0x2c   : > { %s1496_s19 = scalar_lea.hbm %s1495_s21, 8  ;;  %p1498_p9 = pneg %p1776_p7 }
  0x2d   : > { %p1497_p8 = scmp.ne.s32.totalorder %s1495_s21, %s1496_s19  ;;  %s1501_s13 = scalar_lea.hbm %s1906_s0, 16 }
  0x2e   : > { %p1502_p11 = scmp.lt.s32.totalorder %s1495_s21, %s1906_s0  ;;  %p1503_p0 = scmp.lt.s32.totalorder %s1501_s13, %s1496_s19 }
  0x2f   : > { %p1499_p10 = pnand %p1498_p9, %p1497_p8 }
  0x30   : > { %p1504_p2 = por %p1503_p0, %p1502_p11 }
  0x31   : > { %p1500_p13 = pneg %p1499_p10 }
  0x33   : > { %p1505_p5 = pnand %p1504_p2, %p1500_p13 }
  0x35   : > { %1508 = shalt.err (!%p1505_p5)
}
  0x36   : > { %1286 = dma.hbm_to_vmem [thread:$0]  (!%p1776_p7), %s394_s2, 128, %s396_s16, %s384_s5  }
  0x37   : > { %404 = sbr.rel (%p1704_p3) target bundleno = 2225 (0x8b1), region = 64  ;;  %s1793_s26 = sand.u32 (!%p1704_p3), 1, %s1590_s18  }
  0x38   : > { %s1228_s12 = sshll.u32 (!%p1704_p3), %s1793_s26, 3  ;;  %s407_s15 = scalar_lea.sflag (!%p1704_p3), [#allocation4], %s1793_s26 }
  0x39   : > { %s410_s19 = scalar_lea.vmem (!%p1704_p3), [#allocation3], %s1228_s12 }
  0x3c   : > { %1569 = dma.done.wait (%p1755_p12), %s407_s15, 128  }
  0x3d   : > { %1571 = vsyncadd (%p1755_p12), %s407_s15, 4294967168 }
  0x3e   : > { %1573 = dma.done.wait (%p50_p1), [#allocation7], 8192  }
  0x3f   : > { %1575 = vsyncadd (%p50_p1), [#allocation7], 4294959104 }
  0x40   : > { %1577 = dma.done.wait (%p50_p1), [#allocation10], 4096  }
  0x41   : > { %1579 = vsyncadd (%p50_p1), [#allocation10], 4294963200  ;;  %v1811_v0 = vld [vmem:[%s410_s19] sm:$0xff]  ;;  %v548_v2 = vld [vmem:[#allocation6 + $0x168] sm:$0xff]  ;;  %vm613_vm3 = vcmask 64512   ;;  %s1608_s28 = smov 120  }
  0x42   : > { %473 = vadd.xlane.f32.xlu0 %v1811_v0  ;;  %v476_v1 = vmul.f32 %v1811_v0, %v1811_v0  ;;  %v549_v3 = vld [vmem:[#allocation6 + $0x170] sm:$0xff]  ;;  %v550_v4 = vld [vmem:[#allocation6 + $0x178] sm:$0xff]  ;;  %551 = vmatpush.msra.mxu0 %v548_v2  ;;  %v547_v7 = vld [vmem:[#allocation6 + $0x160] sm:$0xff]  ;;  %s1609_s16 = smov 112   ;;  %s1610_s1 = smov 104  }
  0x43   : > { %571 = vmatpush.msra.mxu1 %v549_v3  ;;  %591 = vmatpush.msra.mxu2 %v550_v4  ;;  %v545_v5 = vld [vmem:[#allocation6 + $0x150] sm:$0xff]  ;;  %v546_v6 = vld [vmem:[#allocation6 + $0x158] sm:$0xff]  ;;  %v543_v9 = vld [vmem:[#allocation6 + $0x140] sm:$0xff]  ;;  %s1611_s23 = smov 8   ;;  %s1612_s27 = smov 16  }
  0x44   : > { %552 = vmatpush.msra.mxu0 %v545_v5  ;;  %v542_v8 = vld [vmem:[#allocation6 + $0x138] sm:$0xff]  ;;  %v544_v10 = vld [vmem:[#allocation6 + $0x148] sm:$0xff]  ;;  %v539_v11 = vld [vmem:[#allocation6 + $0x120] sm:$0xff]  ;;  %s1614_s13 = smov 24   ;;  %s1247_s25 = sshll.u32 %s1699_s24, 3 }
  0x45   : > { %572 = vmatpush.msra.mxu1 %v546_v6  ;;  %592 = vmatpush.msra.mxu2 %v547_v7  ;;  %v540_v12 = vld [vmem:[#allocation6 + $0x128] sm:$0xff]  ;;  %v541_v13 = vld [vmem:[#allocation6 + $0x130] sm:$0xff]  ;;  %v538_v16 = vld [vmem:[#allocation6 + $0x118] sm:$0xff]  ;;  %s1095_s24 = scalar_lea.sflag [#allocation5], %s1793_s26 }
  0x46   : > { %553 = vmatpush.msra.mxu0 %v542_v8  ;;  %v536_v14 = vld [vmem:[#allocation6 + $0x108] sm:$0xff]  ;;  %v537_v15 = vld [vmem:[#allocation6 + $0x110] sm:$0xff]  ;;  %v534_v18 = vld [vmem:[#allocation6 + $0xf8] sm:$0xff] }
  0x47   : > { %573 = vmatpush.msra.mxu1 %v543_v9  ;;  %593 = vmatpush.msra.mxu2 %v544_v10  ;;  %v533_v17 = vld [vmem:[#allocation6 + $0xf0] sm:$0xff]  ;;  %v535_v19 = vld [vmem:[#allocation6 + $0x100] sm:$0xff]  ;;  %v530_v20 = vld [vmem:[#allocation6 + $0xd8] sm:$0xff] }
  0x48   : > { %554 = vmatpush.msra.mxu0 %v539_v11  ;;  %v531_v21 = vld [vmem:[#allocation6 + $0xe0] sm:$0xff]  ;;  %v532_v22 = vld [vmem:[#allocation6 + $0xe8] sm:$0xff]  ;;  %v529_v25 = vld [vmem:[#allocation6 + $0xd0] sm:$0xff] }
  0x49   : > { %574 = vmatpush.msra.mxu1 %v540_v12  ;;  %594 = vmatpush.msra.mxu2 %v541_v13  ;;  %v527_v23 = vld [vmem:[#allocation6 + $0xc0] sm:$0xff]  ;;  %v528_v24 = vld [vmem:[#allocation6 + $0xc8] sm:$0xff]  ;;  %v525_v27 = vld [vmem:[#allocation6 + $0xb0] sm:$0xff] }
  0x4a   : > { %477 = vadd.xlane.f32.xlu0 %v476_v1  ;;  %555 = vmatpush.msra.mxu0 %v536_v14  ;;  %v524_v26 = vld [vmem:[#allocation6 + $0xa8] sm:$0xff]  ;;  %v526_v28 = vld [vmem:[#allocation6 + $0xb8] sm:$0xff]  ;;  %v521_v29 = vld [vmem:[#allocation6 + $0x90] sm:$0xff] }
  0x4b   : > { %575 = vmatpush.msra.mxu1 %v537_v15  ;;  %595 = vmatpush.msra.mxu2 %v538_v16  ;;  %v522_v30 = vld [vmem:[#allocation6 + $0x98] sm:$0xff]  ;;  %v523_v31 = vld [vmem:[#allocation6 + $0xa0] sm:$0xff]  ;;  %v520_v34 = vld [vmem:[#allocation6 + $0x88] sm:$0xff] }
  0x4c   : > { %556 = vmatpush.msra.mxu0 %v533_v17  ;;  %v518_v32 = vld [vmem:[#allocation6 + $0x78] sm:$0xff]  ;;  %v519_v33 = vld [vmem:[#allocation6 + $0x80] sm:$0xff]  ;;  %v516_v36 = vld [vmem:[#allocation6 + $0x68] sm:$0xff] }
  0x4d   : > { %576 = vmatpush.msra.mxu1 %v534_v18  ;;  %596 = vmatpush.msra.mxu2 %v535_v19  ;;  %v515_v35 = vld [vmem:[#allocation6 + $0x60] sm:$0xff]  ;;  %v517_v37 = vld [vmem:[#allocation6 + $0x70] sm:$0xff]  ;;  %v512_v38 = vld [vmem:[#allocation6 + $0x48] sm:$0xff] }
  0x4e   : > { %557 = vmatpush.msra.mxu0 %v530_v20  ;;  %v513_v39 = vld [vmem:[#allocation6 + $0x50] sm:$0xff]  ;;  %v514_v40 = vld [vmem:[#allocation6 + $0x58] sm:$0xff]  ;;  %v511_v44 = vld [vmem:[#allocation6 + $0x40] sm:$0xff] }
  0x4f   : > { %577 = vmatpush.msra.mxu1 %v531_v21  ;;  %597 = vmatpush.msra.mxu2 %v532_v22  ;;  %v509_v41 = vld [vmem:[#allocation6 + $0x30] sm:$0xff]  ;;  %v510_v42 = vld [vmem:[#allocation6 + $0x38] sm:$0xff]  ;;  %v507_v46 = vld [vmem:[#allocation6 + $0x20] sm:$0xff] }
  0x50   : > { %558 = vmatpush.msra.mxu0 %v527_v23  ;;  %v506_v45 = vld [vmem:[#allocation6 + $0x18] sm:$0xff]  ;;  %v508_v47 = vld [vmem:[#allocation6 + $0x28] sm:$0xff]  ;;  %v503_v48 = vld [vmem:[#allocation6] sm:$0xff] }
  0x51   : > { %578 = vmatpush.msra.mxu1 %v528_v24  ;;  %598 = vmatpush.msra.mxu2 %v529_v25  ;;  %v504_v49 = vld [vmem:[#allocation6 + $0x8] sm:$0xff]  ;;  %v505_v50 = vld [vmem:[#allocation6 + $0x10] sm:$0xff] }
  0x52   : > { %559 = vmatpush.msra.mxu0 %v524_v26  ;;  %v1348_v1 = vld [vmem:[%s1913_s7] ss:$0 sm:$0xff] }
  0x53   : > { %579 = vmatpush.msra.mxu1 %v525_v27  ;;  %599 = vmatpush.msra.mxu2 %v526_v28  ;;  %v1349_v4 = vld [vmem:[%s1914_s8] ss:$0 sm:$0xff] }
  0x54   : > { %560 = vmatpush.msra.mxu0 %v521_v29 }
  0x55   : > { %580 = vmatpush.msra.mxu1 %v522_v30  ;;  %600 = vmatpush.msra.mxu2 %v523_v31 }
  0x56   : > { %561 = vmatpush.msra.mxu0 %v518_v32 }
  0x57   : > { %581 = vmatpush.msra.mxu1 %v519_v33  ;;  %601 = vmatpush.msra.mxu2 %v520_v34 }
  0x58   : > { %562 = vmatpush.msra.mxu0 %v515_v35 }
  0x59   : > { %582 = vmatpush.msra.mxu1 %v516_v36  ;;  %602 = vmatpush.msra.mxu2 %v517_v37 }
  0x5a   : > { %563 = vmatpush.msra.mxu0 %v512_v38 }
  0x5b   : > { %583 = vmatpush.msra.mxu1 %v513_v39  ;;  %603 = vmatpush.msra.mxu2 %v514_v40 }
  0x5c   : > { %564 = vmatpush.msra.mxu0 %v509_v41 }
  0x5d   : > { %584 = vmatpush.msra.mxu1 %v510_v42  ;;  %604 = vmatpush.msra.mxu2 %v511_v44 }
  0x5e   : > { %565 = vmatpush.msra.mxu0 %v506_v45 }
  0x5f   : > { %585 = vmatpush.msra.mxu1 %v507_v46  ;;  %605 = vmatpush.msra.mxu2 %v508_v47 }
  0x60   : > { %566 = vmatpush.msra.mxu0 %v503_v48 }
  0x61   : > { %586 = vmatpush.msra.mxu1 %v504_v49  ;;  %606 = vmatpush.msra.mxu2 %v505_v50 }
  0xb5   : > { %v474_v43 = vpop.xlane.xlu0 %473 }
  0xb6   : > { %v475_v51 = vmul.f32 0.03125, %v474_v43 }
  0xb8   : > { %v480_v53 = vmul.f32 %v475_v51, %v475_v51  ;;  %v482_v63 = vsub.f32 %v1811_v0, %v475_v51 }
  0xbd   : > { %v478_v52 = vpop.xlane.xlu0 %477 }
  0xbe   : > { %v479_v54 = vmul.f32 0.03125, %v478_v52 }
  0xc0   : > { %v481_v55 = vsub.f32 %v479_v54, %v480_v53 }
  0xc2   : > { %v483_v56 = vadd.f32 1e-05, %v481_v55 }
  0xc4   : > { %1354 = vrsqrt.f32 %v483_v56  ;;  %vm490_vm1 = vweird.f32 %v483_v56 }
  0xca   : > { %v1355_v57 = vpop.eup %1354 }
  0xcb   : > { %v485_v58 = vmul.f32 %v1355_v57, %v483_v56  ;;  %vm491_vm0 = vweird.f32 %v1355_v57 }
  0xcc   : > { %vm492_vm2 = vmor %vm490_vm1, %vm491_vm0 }
  0xcd   : > { %v486_v59 = vmul.f32 %v1355_v57, %v485_v58 }
  0xcf   : > { %v487_v60 = vmul.f32 0.5, %v486_v59 }
  0xd1   : > { %v488_v61 = vsub.f32 1.5, %v487_v60 }
  0xd3   : > { %v489_v62 = vmul.f32 %v1355_v57, %v488_v61 }
  0xd5   : > { %v493_v2 = vsel %vm492_vm2, %v1355_v57, %v489_v62 }
  0xd6   : > { %v494_v3 = vmul.f32 %v493_v2, %v482_v63 }
  0xd8   : > { %v498_v5 = vmul.f32 %v1348_v1, %v494_v3 }
  0xda   : > { %v502_v6 = vadd.f32 %v1349_v4, %v498_v5 }
  0xdc   : > { %567 = vmatmul.f32.vlgmr.msra.gmra.mxu0 %v502_v6  ;;  %587 = vmatmul.f32.vlgmr.msra.gmra.mxu1 %v502_v6 }
  0xdd   : > { %607 = vmatmul.f32.vlgmr.msra.gmra.mxu2 %v502_v6 }
 0x159   : > { %v568_v7 = vpop.f32.mrf.mxu0  ;;  %v588_v8 = vpop.f32.mrf.mxu1 }
 0x15a   : > { %v611_v9 = vmul.f32 0.35355338, %v568_v7  ;;  %1234 = vmatpush.xpose.msk.msrb.mxu2 %vm613_vm3, %v588_v8 }
 0x15c   : > { %688 = vrot.lane.b32.xlu2 %v611_v9, %s1608_s28 }
 0x15d   : > { %1235 = vmatmul.msk.f32.vlgmr.msrb.gmra.mxu2 %vm613_vm3, %v611_v9 }
 0x160   : > { %v608_v10 = vpop.f32.mrf.mxu2 }
 0x161   : > { %726 = vrot.lane.b32.xlu0 %v608_v10, %s1608_s28  ;;  %667 = vmatpush.msra.mxu3 %v608_v10 }
 0x169   : > { %773 = vrot.lane.b32.xlu0 %v611_v9, %s1609_s16 }
 0x171   : > { %810 = vrot.lane.b32.xlu0 %v608_v10, %s1609_s16 }
 0x179   : > { %857 = vrot.lane.b32.xlu0 %v611_v9, %s1610_s1 }
 0x1b6   : > { %v689_v21 = vpop.permute.xlu2 %688 }
 0x1d3   : > { %v727_v11 = vpop.permute.xlu0 %726 }
 0x1db   : > { %v774_v12 = vpop.permute.xlu0 %773 }
 0x1e0   : > { %v637_v13 = vpop.f32.mrf.mxu2 }
 0x1e1   : > { %v640_v14 = vsel %vm613_vm3, %v637_v13, -inf }
 0x1e2   : > { %641 = vmax.xlane.f32.xlu1 %v640_v14  ;;  %v957_v14 = vld [vmem:[#allocation8 + $0x78] sm:$0xff] }
 0x1e3   : > { %v811_v15 = vpop.permute.xlu0 %810 }
 0x1e4   : > { %831 = vmatpush.msra.mxu2 %v811_v15  ;;  %v956_v15 = vld [vmem:[#allocation8 + $0x70] sm:$0xff] }
 0x1eb   : > { %v858_v41 = vpop.permute.xlu0 %857 }
 0x1fb   : > { %690 = vrot.lane.b32.xlu1 %v588_v8, %s1608_s28 }
 0x203   : > { %775 = vrot.lane.b32.xlu1 %v588_v8, %s1609_s16 }
 0x255   : > { %v642_v16 = vpop.xlane.xlu1 %641 }
 0x256   : > { %v643_v17 = vsub.f32 %v637_v13, %v642_v16  ;;  %v955_v16 = vld [vmem:[#allocation8 + $0x68] sm:$0xff] }
 0x258   : > { %v644_v18 = vmul.f32 1.442695, %v643_v17  ;;  %v954_v17 = vld [vmem:[#allocation8 + $0x60] sm:$0xff] }
 0x25a   : > { %1356 = vpow2.f32 %v644_v18 }
 0x260   : > { %v1826_v19 = vpop.eup %1356 }
 0x261   : > { %1236 = vmatmul.msk.f32.vlgmr.msra.gmra.mxu3 %vm613_vm3, %v1826_v19  ;;  %v646_v1 = vsel %vm613_vm3, %v1826_v19, 0.0  ;;  %v953_v19 = vld [vmem:[#allocation8 + $0x58] sm:$0xff] }
 0x26d   : > { %v691_v20 = vpop.permute.xlu1 %690 }
 0x26e   : > { %1237 = vmatpush.xpose.msk.msrb.mxu3 %vm613_vm3, %v691_v20 }
 0x271   : > { %1238 = vmatmul.msk.f32.vlgmr.msrb.gmra.mxu3 %vm613_vm3, %v689_v21 }
 0x272   : > { %747 = vmatpush.msra.mxu3 %v727_v11 }
 0x275   : > { %v776_v22 = vpop.permute.xlu1 %775 }
 0x276   : > { %1240 = vmatpush.xpose.msk.msrb.mxu3 %vm613_vm3, %v776_v22  ;;  %v952_v22 = vld [vmem:[#allocation8 + $0x50] sm:$0xff] }
 0x2e4   : > { %v1833_v23 = vpop.f32.mrf.mxu3 }
 0x2f4   : > { %v713_v24 = vpop.f32.mrf.mxu3 }
 0x2f5   : > { %v716_v25 = vsel %vm613_vm3, %v713_v24, -inf }
 0x2f6   : > { %717 = vmax.xlane.f32.xlu2 %v716_v25 }
 0x30e   : > { %859 = vrot.lane.b32.xlu2 %v588_v8, %s1610_s1 }
 0x316   : > { %894 = vrot.lane.b32.xlu2 %v608_v10, %s1610_s1 }
 0x369   : > { %v718_v26 = vpop.xlane.xlu2 %717 }
 0x36a   : > { %v719_v27 = vsub.f32 %v713_v24, %v718_v26  ;;  %v951_v26 = vld [vmem:[#allocation8 + $0x48] sm:$0xff] }
 0x36c   : > { %v720_v28 = vmul.f32 1.442695, %v719_v27 }
 0x36e   : > { %1358 = vpow2.f32 %v720_v28 }
 0x371   : > { %v860_v29 = vpop.permute.xlu2 %859 }
 0x372   : > { %1243 = vmatpush.xpose.msk.msrb.mxu2 %vm613_vm3, %v860_v29  ;;  %v950_v29 = vld [vmem:[#allocation8 + $0x40] sm:$0xff] }
 0x374   : > { %v1359_v30 = vpop.eup %1358 }
 0x375   : > { %1239 = vmatmul.msk.f32.vlgmr.msra.gmra.mxu3 %vm613_vm3, %v1359_v30  ;;  %v722_v31 = vsel %vm613_vm3, %v1359_v30, 0.0 }
 0x376   : > { %723 = vadd.xlane.f32.xlu2 %v722_v31  ;;  %958 = vmatpush.msra.mxu3 %v957_v14 }
 0x378   : > { %959 = vmatpush.msra.mxu3 %v956_v15  ;;  %v1067_v15 = vld [vmem:[#allocation11 + $0x78] sm:$0xff] }
 0x379   : > { %v895_v39 = vpop.permute.xlu2 %894  ;;  %1072 = vmatpush.msrb.mxu1 %v1067_v15 }
 0x37a   : > { %960 = vmatpush.msra.mxu3 %v955_v16  ;;  %v1066_v16 = vld [vmem:[#allocation11 + $0x70] sm:$0xff] }
 0x37b   : > { %1073 = vmatpush.msrb.mxu1 %v1066_v16 }
 0x37c   : > { %961 = vmatpush.msra.mxu3 %v954_v17 }
 0x37d   : > { %1241 = vmatmul.msk.f32.vlgmr.msrb.gmra.mxu3 %vm613_vm3, %v774_v12  ;;  %v1613_v12 = vmov 0.0  }
 0x37e   : > { %612 = vst [vmem:[#allocation2] sm:$0xff] %v1613_v12  ;;  %962 = vmatpush.msra.mxu3 %v953_v19  ;;  %v1011_v12 = vld [vmem:[#allocation9] sm:$0xff] }
 0x380   : > { %963 = vmatpush.msra.mxu3 %v952_v22  ;;  %v1064_v22 = vld [vmem:[#allocation11 + $0x60] sm:$0xff] }
 0x382   : > { %964 = vmatpush.msra.mxu3 %v951_v26  ;;  %v1062_v26 = vld [vmem:[#allocation11 + $0x50] sm:$0xff] }
 0x384   : > { %965 = vmatpush.msra.mxu3 %v950_v29 }
 0x3e9   : > { %v724_v42 = vpop.xlane.xlu2 %723 }
 0x3ea   : > { %v763_v51 = vand.u32 2147483648, %v724_v42  ;;  %vm757_vm5 = vweird.f32 %v724_v42  ;;  %v761_v52 = vand.u32 2147483647, %v724_v42 }
 0x3ec   : > { %v764_v54 = vor.u32 1.1754944e-38, %v763_v51  ;;  %vm762_vm7 = vcmp.eq.f32.partialorder %v761_v52, 8.507059e+37 }
 0x3f8   : > { %v749_v32 = vpop.f32.mrf.mxu3 }
 0x400   : > { %v798_v33 = vpop.f32.mrf.mxu3 }
 0x401   : > { %v801_v34 = vsel %vm613_vm3, %v798_v33, -inf }
 0x402   : > { %802 = vmax.xlane.f32.xlu1 %v801_v34 }
 0x475   : > { %v803_v35 = vpop.xlane.xlu1 %802 }
 0x476   : > { %v804_v36 = vsub.f32 %v798_v33, %v803_v35  ;;  %v949_v33 = vld [vmem:[#allocation8 + $0x38] sm:$0xff] }
 0x477   : > { %966 = vmatpush.msra.mxu3 %v949_v33 }
 0x478   : > { %v805_v37 = vmul.f32 1.442695, %v804_v36 }
 0x47a   : > { %1360 = vpow2.f32 %v805_v37 }
 0x47b   : > { %1362 = vrcp.f32 %v724_v42 }
 0x480   : > { %v1361_v38 = vpop.eup %1360 }
 0x481   : > { %1242 = vmatmul.msk.f32.vlgmr.msra.gmra.mxu2 %vm613_vm3, %v1361_v38  ;;  %v807_v40 = vsel %vm613_vm3, %v1361_v38, 0.0  ;;  %v1363_v44 = vpop.eup %1362  ;;  %v948_v38 = vld [vmem:[#allocation8 + $0x30] sm:$0xff] }
 0x482   : > { %915 = vmatpush.msra.mxu2 %v895_v39  ;;  %808 = vadd.xlane.f32.xlu1 %v807_v40  ;;  %v753_v45 = vmul.f32 %v1363_v44, %v724_v42  ;;  %vm758_vm4 = vweird.f32 %v1363_v44  ;;  %v947_v42 = vld [vmem:[#allocation8 + $0x28] sm:$0xff] }
 0x483   : > { %vm759_vm6 = vmor %vm757_vm5, %vm758_vm4  ;;  %967 = vmatpush.msra.mxu3 %v948_v38  ;;  %vm771_vm5 = vcmask 130112   ;;  %v1055_v38 = vld [vmem:[#allocation11 + $0x18] sm:$0xff] }
 0x484   : > { %v754_v48 = vsub.f32 1.0, %v753_v45  ;;  %v946_v45 = vld [vmem:[#allocation8 + $0x20] sm:$0xff] }
 0x485   : > { %968 = vmatpush.msra.mxu3 %v947_v42 }
 0x486   : > { %v755_v49 = vmul.f32 %v1363_v44, %v754_v48 }
 0x487   : > { %969 = vmatpush.msra.mxu3 %v946_v45 }
 0x488   : > { %v756_v50 = vadd.f32 %v1363_v44, %v755_v49 }
 0x489   : > { %1244 = vmatmul.msk.f32.vlgmr.msrb.gmra.mxu2 %vm613_vm3, %v858_v41 }
 0x48a   : > { %v760_v53 = vsel %vm759_vm6, %v1363_v44, %v756_v50  ;;  %vm855_vm6 = vcmask 195712  }
 0x48b   : > { %v765_v55 = vsel %vm762_vm7, %v764_v54, %v760_v53  ;;  %v945_v53 = vld [vmem:[#allocation8 + $0x18] sm:$0xff]  ;;  %v944_v54 = vld [vmem:[#allocation8 + $0x10] sm:$0xff]  ;;  %vm939_vm7 = vcmask 261312  }
 0x48c   : > { %v766_v56 = vmul.f32 %v765_v55, %v749_v32  ;;  %970 = vmatpush.msra.mxu3 %v945_v53  ;;  %v943_v55 = vld [vmem:[#allocation8 + $0x8] sm:$0xff] }
 0x48e   : > { %971 = vmatpush.msra.mxu3 %v944_v54  ;;  %v1353_v54 = vld [vmem:[%s1912_s6] ss:$0 sm:$0xff] }
 0x490   : > { %972 = vmatpush.msra.mxu3 %v943_v55 }
 0x4f5   : > { %v809_v60 = vpop.xlane.xlu1 %808 }
 0x4f6   : > { %v847_v6 = vand.u32 2147483648, %v809_v60  ;;  %vm841_vm9 = vweird.f32 %v809_v60  ;;  %v845_v7 = vand.u32 2147483647, %v809_v60 }
 0x4f8   : > { %v848_v9 = vor.u32 1.1754944e-38, %v847_v6  ;;  %vm846_vm11 = vcmp.eq.f32.partialorder %v845_v7, 8.507059e+37  ;;  %v1017_v6 = vld [vmem:[#allocation9 + $0x30] sm:$0xff]  ;;  %v1016_v7 = vld [vmem:[#allocation9 + $0x28] sm:$0xff] }
 0x504   : > { %v833_v43 = vpop.f32.mrf.mxu2 }
 0x50c   : > { %v882_v46 = vpop.f32.mrf.mxu2 }
 0x50d   : > { %v885_v47 = vsel %vm613_vm3, %v882_v46, -inf }
 0x50e   : > { %886 = vmax.xlane.f32.xlu0 %v885_v47 }
 0x522   : > { %768 = vrot.lane.b32.xlu0 %v766_v56, %s1611_s23  ;;  %v942_v56 = vld [vmem:[#allocation8] sm:$0xff]  ;;  %s1105_s23 = scalar_lea.hbm %s1917_s11, %s1247_s25 }
 0x523   : > { %973 = vmatpush.msra.mxu3 %v942_v56  ;;  %s1109_s14 = sshll.u32 %s1105_s23, 4  ;;  %s1110_s14 = int_to_ptr.hbm [resolvable:$true] %s1109_s14 }
 0x524   : > { %s1538_s22 = sshra.s32 %s1110_s14, 4  ;;  %s1539_s22 = int_to_ptr.hbm [resolvable:$true] %s1538_s22 }
 0x525   : > { %s1540_s15 = scalar_lea.hbm %s1539_s22, 8  ;;  %p1545_p12 = scmp.lt.s32.totalorder %s1539_s22, %s1917_s11 }
 0x526   : > { %p1541_p1 = scmp.ne.s32.totalorder %s1539_s22, %s1540_s15 }
 0x528   : > { %p1542_p3 = pnand %p1541_p1, %p1762_p4 }
 0x52a   : > { %p1543_p5 = pneg %p1542_p3 }
 0x581   : > { %v887_v57 = vpop.xlane.xlu0 %886 }
 0x582   : > { %v888_v58 = vsub.f32 %v882_v46, %v887_v57 }
 0x584   : > { %v889_v59 = vmul.f32 1.442695, %v888_v58 }
 0x586   : > { %1364 = vpow2.f32 %v889_v59 }
 0x587   : > { %1366 = vrcp.f32 %v809_v60 }
 0x58c   : > { %v1365_v61 = vpop.eup %1364 }
 0x58d   : > { %1245 = vmatmul.msk.f32.vlgmr.msra.gmra.mxu2 %vm613_vm3, %v1365_v61  ;;  %v891_v62 = vsel %vm613_vm3, %v1365_v61, 0.0  ;;  %v1367_v63 = vpop.eup %1366  ;;  %v1026_v61 = vld [vmem:[#allocation9 + $0x78] sm:$0xff] }
 0x58e   : > { %892 = vadd.xlane.f32.xlu1 %v891_v62  ;;  %v837_v2 = vmul.f32 %v1367_v63, %v809_v60  ;;  %vm842_vm8 = vweird.f32 %v1367_v63  ;;  %1031 = vmatpush.msrb.mxu0 %v1026_v61  ;;  %v1025_v62 = vld [vmem:[#allocation9 + $0x70] sm:$0xff] }
 0x58f   : > { %vm843_vm10 = vmor %vm841_vm9, %vm842_vm8 }
 0x590   : > { %v838_v3 = vsub.f32 1.0, %v837_v2  ;;  %1032 = vmatpush.msrb.mxu0 %v1025_v62  ;;  %v1022_v2 = vld [vmem:[#allocation9 + $0x58] sm:$0xff] }
 0x592   : > { %v839_v4 = vmul.f32 %v1367_v63, %v838_v3  ;;  %v1021_v3 = vld [vmem:[#allocation9 + $0x50] sm:$0xff] }
 0x594   : > { %v840_v5 = vadd.f32 %v1367_v63, %v839_v4  ;;  %v769_v51 = vpop.permute.xlu0 %768  ;;  %v1019_v4 = vld [vmem:[#allocation9 + $0x40] sm:$0xff] }
 0x596   : > { %647 = vadd.xlane.f32.xlu1 %v646_v1  ;;  %v844_v8 = vsel %vm843_vm10, %v1367_v63, %v840_v5  ;;  %v1024_v63 = vld [vmem:[#allocation9 + $0x68] sm:$0xff]  ;;  %v1023_v1 = vld [vmem:[#allocation9 + $0x60] sm:$0xff]  ;;  %v1018_v5 = vld [vmem:[#allocation9 + $0x38] sm:$0xff] }
 0x597   : > { %v849_v10 = vsel %vm846_vm11, %v848_v9, %v844_v8  ;;  %1033 = vmatpush.msrb.mxu0 %v1024_v63  ;;  %v1015_v8 = vld [vmem:[#allocation9 + $0x20] sm:$0xff]  ;;  %v1014_v9 = vld [vmem:[#allocation9 + $0x18] sm:$0xff] }
 0x598   : > { %v850_v11 = vmul.f32 %v849_v10, %v833_v43  ;;  %v1013_v10 = vld [vmem:[#allocation9 + $0x10] sm:$0xff] }
 0x599   : > { %1034 = vmatpush.msrb.mxu0 %v1023_v1 }
 0x59b   : > { %1035 = vmatpush.msrb.mxu0 %v1022_v2 }
 0x59d   : > { %1036 = vmatpush.msrb.mxu0 %v1021_v3 }
 0x5af   : > { %852 = vrot.lane.b32.xlu1 %v850_v11, %s1612_s27  ;;  %v1012_v11 = vld [vmem:[#allocation9 + $0x8] sm:$0xff]  ;;  %s469_s27 = scalar_lea.vmem [#allocation12], %s1228_s12  ;;  %s1544_s12 = scalar_lea.hbm %s1917_s11, 16 }
 0x5b0   : > { %p1546_p7 = scmp.lt.s32.totalorder %s1544_s12, %s1540_s15 }
 0x5b2   : > { %p1547_p8 = por %p1546_p7, %p1545_p12 }
 0x5b4   : > { %p1548_p9 = pnand %p1547_p8, %p1543_p5 }
 0x601   : > { %v893_v13 = vpop.xlane.xlu1 %892 }
 0x602   : > { %1368 = vrcp.f32 %v893_v13  ;;  %v931_v25 = vand.u32 2147483648, %v893_v13  ;;  %v929_v28 = vand.u32 2147483647, %v893_v13  ;;  %vm925_vm13 = vweird.f32 %v893_v13 }
 0x604   : > { %v932_v32 = vor.u32 1.1754944e-38, %v931_v25  ;;  %vm930_vm15 = vcmp.eq.f32.partialorder %v929_v28, 8.507059e+37  ;;  %v1063_v25 = vld [vmem:[#allocation11 + $0x58] sm:$0xff]  ;;  %v1060_v28 = vld [vmem:[#allocation11 + $0x40] sm:$0xff] }
 0x608   : > { %v1369_v18 = vpop.eup %1368 }
 0x609   : > { %v921_v20 = vmul.f32 %v1369_v18, %v893_v13  ;;  %v648_v21 = vpop.xlane.xlu1 %647  ;;  %vm926_vm12 = vweird.f32 %v1369_v18 }
 0x60a   : > { %1370 = vrcp.f32 %v648_v21  ;;  %vm927_vm14 = vmor %vm925_vm13, %vm926_vm12  ;;  %v683_v41 = vand.u32 2147483648, %v648_v21  ;;  %v681_v44 = vand.u32 2147483647, %v648_v21  ;;  %vm677_vm1 = vweird.f32 %v648_v21 }
 0x60b   : > { %v922_v24 = vsub.f32 1.0, %v921_v20  ;;  %v1065_v20 = vld [vmem:[#allocation11 + $0x68] sm:$0xff] }
 0x60c   : > { %v684_v47 = vor.u32 1.1754944e-38, %v683_v41  ;;  %vm682_vm4 = vcmp.eq.f32.partialorder %v681_v44, 8.507059e+37  ;;  %1074 = vmatpush.msrb.mxu1 %v1065_v20  ;;  %v1350_v41 = vld [vmem:[%s1915_s9] ss:$0 sm:$0xff] }
 0x60d   : > { %v923_v27 = vmul.f32 %v1369_v18, %v922_v24  ;;  %v1351_v44 = vld [vmem:[%s1916_s10] ss:$0 sm:$0xff] }
 0x60e   : > { %1075 = vmatpush.msrb.mxu1 %v1064_v22 }
 0x60f   : > { %v924_v30 = vadd.f32 %v1369_v18, %v923_v27  ;;  %v1061_v27 = vld [vmem:[#allocation11 + $0x48] sm:$0xff] }
 0x610   : > { %v1371_v31 = vpop.eup %1370  ;;  %v917_v36 = vpop.f32.mrf.mxu2  ;;  %1076 = vmatpush.msrb.mxu1 %v1063_v25 }
 0x611   : > { %v673_v34 = vmul.f32 %v1371_v31, %v648_v21  ;;  %v928_v35 = vsel %vm927_vm14, %v1369_v18, %v924_v30  ;;  %vm678_vm0 = vweird.f32 %v1371_v31  ;;  %v1059_v30 = vld [vmem:[#allocation11 + $0x38] sm:$0xff] }
 0x612   : > { %v933_v37 = vsel %vm930_vm15, %v932_v32, %v928_v35  ;;  %vm679_vm2 = vmor %vm677_vm1, %vm678_vm0  ;;  %1077 = vmatpush.msrb.mxu1 %v1062_v26  ;;  %v1058_v32 = vld [vmem:[#allocation11 + $0x30] sm:$0xff] }
 0x613   : > { %v674_v39 = vsub.f32 1.0, %v673_v34  ;;  %v934_v40 = vmul.f32 %v933_v37, %v917_v36  ;;  %v1057_v34 = vld [vmem:[#allocation11 + $0x28] sm:$0xff]  ;;  %v1056_v36 = vld [vmem:[#allocation11 + $0x20] sm:$0xff] }
 0x614   : > { %1078 = vmatpush.msrb.mxu1 %v1061_v27 }
 0x615   : > { %v675_v43 = vmul.f32 %v1371_v31, %v674_v39  ;;  %936 = vrot.lane.b32.xlu0 %v934_v40, %s1614_s13  ;;  %s1107_s13 = sshll.u32 %s469_s27, 4  ;;  %s1108_s13 = int_to_ptr.vmem [resolvable:$true] %s1107_s13 }
 0x616   : > { %1079 = vmatpush.msrb.mxu1 %v1060_v28 }
 0x617   : > { %v676_v46 = vadd.f32 %v1371_v31, %v675_v43 }
 0x618   : > { %1080 = vmatpush.msrb.mxu1 %v1059_v30 }
 0x619   : > { %v680_v48 = vsel %vm679_vm2, %v1371_v31, %v676_v46 }
 0x61a   : > { %v685_v49 = vsel %vm682_vm4, %v684_v47, %v680_v48  ;;  %1081 = vmatpush.msrb.mxu1 %v1058_v32  ;;  %v1054_v47 = vld [vmem:[#allocation11 + $0x10] sm:$0xff]  ;;  %v1053_v48 = vld [vmem:[#allocation11 + $0x8] sm:$0xff] }
 0x61b   : > { %v686_v50 = vmul.f32 %v685_v49, %v1833_v23  ;;  %v1052_v49 = vld [vmem:[#allocation11] sm:$0xff] }
 0x61c   : > { %1082 = vmatpush.msrb.mxu1 %v1057_v34 }
 0x61d   : > { %687 = vst.msk [vmem:[#allocation2] sm:$0xff] %vm613_vm3, %v686_v50  ;;  %v1352_v50 = vld [vmem:[%s1910_s4] ss:$0 sm:$0xff] }
 0x61e   : > { %772 = vst.msk [vmem:[#allocation2] sm:$0xff] %vm771_vm5, %v769_v51  ;;  %1083 = vmatpush.msrb.mxu1 %v1056_v36 }
 0x620   : > { %1084 = vmatpush.msrb.mxu1 %v1055_v38 }
 0x621   : > { %v853_v52 = vpop.permute.xlu1 %852 }
 0x622   : > { %856 = vst.msk [vmem:[#allocation2] sm:$0xff] %vm855_vm6, %v853_v52  ;;  %1085 = vmatpush.msrb.mxu1 %v1054_v47 }
 0x624   : > { %1086 = vmatpush.msrb.mxu1 %v1053_v48 }
 0x626   : > { %1087 = vmatpush.msrb.mxu1 %v1052_v49 }
 0x687   : > { %v937_v57 = vpop.permute.xlu0 %936 }
 0x688   : > { %940 = vst.msk [vmem:[#allocation2] sm:$0xff] %vm939_vm7, %v937_v57 }
 0x68f   : > { %v941_v23 = vld [vmem:[#allocation2] sm:$0xff] }
 0x690   : > { %974 = vmatmul.f32.vlgmr.msra.gmra.mxu3 %v941_v23 }
 0x713   : > { %v975_v58 = vpop.f32.mrf.mxu3 }
 0x714   : > { %v1852_v59 = vadd.f32 %v975_v58, %v1811_v0  ;;  %v1020_v0 = vld [vmem:[#allocation9 + $0x48] sm:$0xff] }
 0x715   : > { %1037 = vmatpush.msrb.mxu0 %v1020_v0 }
 0x716   : > { %981 = vadd.xlane.f32.xlu2 %v1852_v59  ;;  %v984_v60 = vmul.f32 %v1852_v59, %v1852_v59 }
 0x717   : > { %1038 = vmatpush.msrb.mxu0 %v1019_v4 }
 0x718   : > { %985 = vadd.xlane.f32.xlu0 %v984_v60 }
 0x719   : > { %1039 = vmatpush.msrb.mxu0 %v1018_v5 }
 0x71b   : > { %1040 = vmatpush.msrb.mxu0 %v1017_v6 }
 0x71d   : > { %1041 = vmatpush.msrb.mxu0 %v1016_v7 }
 0x71f   : > { %1042 = vmatpush.msrb.mxu0 %v1015_v8 }
 0x721   : > { %1043 = vmatpush.msrb.mxu0 %v1014_v9 }
 0x723   : > { %1044 = vmatpush.msrb.mxu0 %v1013_v10 }
 0x725   : > { %1045 = vmatpush.msrb.mxu0 %v1012_v11 }
 0x727   : > { %1046 = vmatpush.msrb.mxu0 %v1011_v12 }
 0x789   : > { %v982_v13 = vpop.xlane.xlu2 %981 }
 0x78a   : > { %v983_v14 = vmul.f32 0.03125, %v982_v13 }
 0x78b   : > { %v986_v17 = vpop.xlane.xlu0 %985 }
 0x78c   : > { %v988_v18 = vmul.f32 %v983_v14, %v983_v14  ;;  %v987_v19 = vmul.f32 0.03125, %v986_v17  ;;  %v990_v40 = vsub.f32 %v1852_v59, %v983_v14 }
 0x78e   : > { %v989_v21 = vsub.f32 %v987_v19, %v988_v18 }
 0x790   : > { %v991_v24 = vadd.f32 1e-05, %v989_v21 }
 0x792   : > { %1372 = vrsqrt.f32 %v991_v24  ;;  %vm998_vm8 = vweird.f32 %v991_v24 }
 0x798   : > { %v1373_v29 = vpop.eup %1372 }
 0x799   : > { %v993_v31 = vmul.f32 %v1373_v29, %v991_v24  ;;  %vm999_vm3 = vweird.f32 %v1373_v29 }
 0x79a   : > { %vm1000_vm9 = vmor %vm998_vm8, %vm999_vm3 }
 0x79b   : > { %v994_v33 = vmul.f32 %v1373_v29, %v993_v31 }
 0x79d   : > { %v995_v35 = vmul.f32 0.5, %v994_v33 }
 0x79f   : > { %v996_v37 = vsub.f32 1.5, %v995_v35 }
 0x7a1   : > { %v997_v39 = vmul.f32 %v1373_v29, %v996_v37 }
 0x7a3   : > { %v1001_v42 = vsel %vm1000_vm9, %v1373_v29, %v997_v39 }
 0x7a4   : > { %v1002_v43 = vmul.f32 %v1001_v42, %v990_v40 }
 0x7a6   : > { %v1006_v45 = vmul.f32 %v1350_v41, %v1002_v43 }
 0x7a8   : > { %v1010_v46 = vadd.f32 %v1351_v44, %v1006_v45 }
 0x7aa   : > { %1047 = vmatmul.f32.vlgmr.msrb.gmra.mxu0 %v1010_v46 }
 0x827   : > { %v1048_v51 = vpop.f32.mrf.mxu0 }
 0x828   : > { %v1049_v52 = vadd.f32 %v1352_v50, %v1048_v51 }
 0x82a   : > { %v1051_v53 = vmax.f32 %v1049_v52, 0.0 }
 0x82c   : > { %1088 = vmatmul.f32.vlgmr.msrb.gmra.mxu1 %v1051_v53 }
 0x8a9   : > { %v1089_v55 = vpop.f32.mrf.mxu1 }
 0x8aa   : > { %v1090_v56 = vadd.f32 %v1353_v54, %v1089_v55 }
 0x8ac   : > { %v1092_v57 = vadd.f32 %v1090_v56, %v1852_v59 }
 0x8ae   : > { %1093 = vst [vmem:[%s469_s27] sm:$0xff] %v1092_v57 }
 0x8af   : > { %1551 = shalt.err (!%p1548_p9)
}
 0x8b0   : > { %1268 = dma.vmem_to_hbm [thread:$0]  (%p1762_p4), %s1108_s13, 128, %s1110_s14, %s1095_s24  }
 0x8b1 PF: > { %s1121_s26 = sand.u32 1, %s1586_s17   ;;  %p1936_p10 = scmp.ge.s32.totalorder %s1598_s20, 2 }
 0x8b2   : > { %s1122_s21 = scalar_lea.sflag [#allocation5], %s1121_s26 }
 0x8b3   : > { %p1288_p13 = pnand %p1936_p10, %p1766_p6 }
 0x8b5   : > { %p1289_p11 = pneg %p1288_p13 }
 0x8b7   : > { %1581 = dma.done.wait (%p1289_p11), %s1122_s21, 128  }
 0x8b8   : > { %1583 = vsyncadd (%p1289_p11), %s1122_s21, 4294967168  ;;  %s1937_s28 = sld [smem:[#allocation17_spill]]  ;;  %p26_p0 = scmp.ge.s32.totalorder %s1736_s3, 4  }
 0x8b9   : > { %s1938_s19 = sld [smem:[#allocation18_spill]]  ;;  %s1939_s17 = smov %s1590_s18 }
 0x8ba   : > { %s1941_s20 = smov %s1736_s3  ;;  %28 = sbr.rel (!%p26_p0) target bundleno = 12 (0xc), region = 125 }
 0x8be   : > { %s1940_s18 = smov %s1937_s28 }
 0x8bf   :  { %1128 = vsyncpa [#allocation4], 1 }
 0x8c0   :  { %1130 = vsyncpa [#allocation4 + $0x1], 1 }
 0x8c1   :  { %1131 = vsyncpa [#allocation7], 1 }
 0x8c2   :  { %1132 = vsyncpa [#allocation10], 1 }
 0x8c3   :  { %1133 = vsyncpa [#allocation5], 1 }
 0x8c4   :  { %1135 = vsyncpa [#allocation5 + $0x1], 1 }

</bundles_post_ra>
